<compile_context>
chip_gen: v5e
topology: v5e:2x2
jax: 0.10.0
libtpu: 0.0.40
codegen_flags: <defaults>
</compile_context>

<pallas_src>
import functools

import jax
import jax.numpy as jnp
from jax.experimental import pallas as pl
from jax.experimental.pallas import tpu as pltpu

INPUT_SIZE = 128
HIDDEN = (256, 512, 1024)
LEAKY_SLOPE = 0.01  # PyTorch nn.LeakyReLU default negative_slope


def _leaky_relu(h):
    return jnp.where(h >= 0, h, LEAKY_SLOPE * h)


def _generator_kernel(x_ref,
                      w1_ref, b1_ref,
                      w2_ref, b2_ref,
                      w3_ref, b3_ref,
                      w4_ref, b4_ref,
                      o_ref):
    """Fused MLP forward: ((x@W1+b1)->lrelu)->...->(x@W4+b4)->tanh.

    Matmul operands are bf16 (MXU-native), accumulation and element-wise math
    are f32.  Rows past the real batch in a ragged last tile flow through the
    math and are discarded on (masked) writeback -- harmless.
    """
    h = x_ref[...].astype(jnp.bfloat16)

    h = jnp.dot(h, w1_ref[...], preferred_element_type=jnp.float32) + b1_ref[...]
    h = _leaky_relu(h).astype(jnp.bfloat16)

    h = jnp.dot(h, w2_ref[...], preferred_element_type=jnp.float32) + b2_ref[...]
    h = _leaky_relu(h).astype(jnp.bfloat16)

    h = jnp.dot(h, w3_ref[...], preferred_element_type=jnp.float32) + b3_ref[...]
    h = _leaky_relu(h).astype(jnp.bfloat16)

    h = jnp.dot(h, w4_ref[...], preferred_element_type=jnp.float32) + b4_ref[...]
    o_ref[...] = jnp.tanh(h).astype(o_ref.dtype)


def _auto_block_b(batch):
    """Pick a batch tile: big MXU-friendly tiles, but keep >=2 grid steps when
    the batch allows so both v7x TensorCores are used."""
    if batch >= 512:
        return 256                        # multiple of the 256-wide v6e/v7x MXU
    if batch > 8:
        half = pl.cdiv(batch, 2)          # two-ish tiles for megacore
        return pl.cdiv(half, 8) * 8       # sublane-aligned
    return batch                          # tiny batch: one full-batch tile


@functools.partial(jax.jit, static_argnames=("block_b",))
def vanilla_generator_forward(x, params, *, block_b=None):
    """x: (B, INPUT_SIZE) float32 noise.  Returns (B, output_size) in (-1, 1)."""
    b, d_in = x.shape
    assert d_in == INPUT_SIZE
    (w1, b1), (w2, b2), (w3, b3), (w4, b4) = params
    out_size = w4.shape[1]

    # Lane-dense output: pad the last layer to a multiple of 128 columns so the
    # final matmul / output stores are unmasked; slice the pad off afterwards.
    out_pad = max(128, pl.cdiv(out_size, 128) * 128)
    if out_pad != out_size:
        w4 = jnp.pad(w4, ((0, 0), (0, out_pad - out_size)))
        b4 = jnp.pad(b4, (0, out_pad - out_size))

    # bf16 matmul operands; biases stay f32 and broadcast as (1, N) rows.
    w1b, w2b, w3b, w4b = (w.astype(jnp.bfloat16) for w in (w1, w2, w3, w4))
    b1r, b2r, b3r, b4r = (bi.reshape(1, -1).astype(jnp.float32)
                          for bi in (b1, b2, b3, b4))

    if block_b is None:
        block_b = _auto_block_b(b)

    grid = (pl.cdiv(b, block_b),)

    def const(shape):
        # Whole-array block, same for every grid step (weights / biases stay
        # resident in VMEM across batch tiles).
        return pl.BlockSpec(shape, lambda i: (0, 0))

    out_padded = pl.pallas_call(
        _generator_kernel,
        out_shape=jax.ShapeDtypeStruct((b, out_pad), x.dtype),
        grid_spec=pltpu.PrefetchScalarGridSpec(
            num_scalar_prefetch=0,
            grid=grid,
            in_specs=[
                pl.BlockSpec((block_b, d_in), lambda i: (i, 0)),   # x tile
                const(w1b.shape), const(b1r.shape),
                const(w2b.shape), const(b2r.shape),
                const(w3b.shape), const(b3r.shape),
                const(w4b.shape), const(b4r.shape),
            ],
            out_specs=pl.BlockSpec((block_b, out_pad), lambda i: (i, 0)),
        ),
        compiler_params=pltpu.CompilerParams(
            dimension_semantics=("parallel",),
            vmem_limit_bytes=64 * 1024 * 1024,
        ),
    )(x, w1b, b1r, w2b, b2r, w3b, b3r, w4b, b4r)

    if out_pad != out_size:
        return out_padded[:, :out_size]
    return out_padded


def init_generator_params(key, output_size, input_size=INPUT_SIZE):
    """Deterministic init mimicking nn.Linear default: U(-1/sqrt(fan_in), 1/sqrt(fan_in)).
    Weights stored as (in_features, out_features)."""
    dims = (input_size,) + HIDDEN + (output_size,)
    params = []
    for i in range(len(dims) - 1):
        fan_in, fan_out = dims[i], dims[i + 1]
        key, kw, kb = jax.random.split(key, 3)
        bound = 1.0 / (fan_in ** 0.5)
        w = jax.random.uniform(kw, (fan_in, fan_out), jnp.float32, -bound, bound)
        b = jax.random.uniform(kb, (fan_out,), jnp.float32, -bound, bound)
        params.append((w, b))
    return params


def _reference_forward(x, params):
    """Plain-JAX f32 reference matching the PyTorch module semantics."""
    h = x
    for idx, (w, b) in enumerate(params):
        h = h @ w + b
        if idx < len(params) - 1:
            h = jnp.where(h >= 0, h, LEAKY_SLOPE * h)
        else:
            h = jnp.tanh(h)
    return h


if __name__ == "__main__":
    key = jax.random.PRNGKey(0)
    output_size = 64      # small flattened image
    batch = 16            # small batch; auto tiling -> 2 grid steps of 8 rows

    k_noise, k_params = jax.random.split(key)
    # generate_noise(n): standard normal noise of shape (n, input_size)
    noise = jax.random.normal(k_noise, (batch, INPUT_SIZE), jnp.float32)
    params = init_generator_params(k_params, output_size)

    out = vanilla_generator_forward(noise, params)
    out = jax.block_until_ready(out)

    ref = _reference_forward(noise, params)
    assert out.shape == (batch, output_size)
    # bf16 matmul operands vs. f32 reference -> loosened tolerance.
    max_err = float(jnp.max(jnp.abs(out - ref)))
    assert jnp.allclose(out, ref, atol=2e-2, rtol=2e-2), f"mismatch vs reference (max err {max_err})"

    print("KERNEL_OK")
</pallas_src>

<mosaic_0001>
module attributes {stable_mosaic.version = 11 : i64} {
  func.func @_generator_kernel(%arg0: i32, %arg1: memref<8x128xf32, #tpu.memory_space<vmem>>, %arg2: memref<128x256xbf16, #tpu.memory_space<vmem>>, %arg3: memref<1x256xf32, #tpu.memory_space<vmem>>, %arg4: memref<256x512xbf16, #tpu.memory_space<vmem>>, %arg5: memref<1x512xf32, #tpu.memory_space<vmem>>, %arg6: memref<512x1024xbf16, #tpu.memory_space<vmem>>, %arg7: memref<1x1024xf32, #tpu.memory_space<vmem>>, %arg8: memref<1024x128xbf16, #tpu.memory_space<vmem>>, %arg9: memref<1x128xf32, #tpu.memory_space<vmem>>, %arg10: memref<8x128xf32, #tpu.memory_space<vmem>>) attributes {dimension_semantics = [#tpu.dimension_semantics<parallel>], iteration_bounds = array<i64: 2>, scalar_prefetch = 0 : i64, scratch_operands = 0 : i64, tpu.core_type = #tpu.core_type<tc>, window_params = [{transform_indices = @transform_0, window_bounds = array<i64: 8, 128>}, {pipeline_mode = #tpu.pipeline_mode<synchronous>, transform_indices = @transform_1, window_bounds = array<i64: 128, 256>}, {pipeline_mode = #tpu.pipeline_mode<synchronous>, transform_indices = @transform_2, window_bounds = array<i64: 1, 256>}, {pipeline_mode = #tpu.pipeline_mode<synchronous>, transform_indices = @transform_3, window_bounds = array<i64: 256, 512>}, {pipeline_mode = #tpu.pipeline_mode<synchronous>, transform_indices = @transform_4, window_bounds = array<i64: 1, 512>}, {pipeline_mode = #tpu.pipeline_mode<synchronous>, transform_indices = @transform_5, window_bounds = array<i64: 512, 1024>}, {pipeline_mode = #tpu.pipeline_mode<synchronous>, transform_indices = @transform_6, window_bounds = array<i64: 1, 1024>}, {pipeline_mode = #tpu.pipeline_mode<synchronous>, transform_indices = @transform_7, window_bounds = array<i64: 1024, 128>}, {pipeline_mode = #tpu.pipeline_mode<synchronous>, transform_indices = @transform_8, window_bounds = array<i64: 1, 128>}, {transform_indices = @transform_9, window_bounds = array<i64: 8, 128>}]} {
    %c0 = arith.constant 0 : index
    %c0_0 = arith.constant 0 : index
    %0 = vector.load %arg1[%c0, %c0_0] : memref<8x128xf32, #tpu.memory_space<vmem>>, vector<8x128xf32>
    %1 = arith.truncf %0 : vector<8x128xf32> to vector<8x128xbf16>
    %c0_1 = arith.constant 0 : index
    %c0_2 = arith.constant 0 : index
    %2 = vector.load %arg2[%c0_1, %c0_2] : memref<128x256xbf16, #tpu.memory_space<vmem>>, vector<128x256xbf16>
    %cst = arith.constant dense<0.000000e+00> : vector<8x256xf32>
    %3 = tpu.matmul %1, %2, %cst {dimension_numbers = #tpu.dot_dimension_numbers<[1], [0], [0], [1], [0, 0, 1, 1], [], []>} : vector<8x128xbf16>, vector<128x256xbf16>, vector<8x256xf32> -> vector<8x256xf32>
    %c0_3 = arith.constant 0 : index
    %c0_4 = arith.constant 0 : index
    %4 = vector.load %arg3[%c0_3, %c0_4] : memref<1x256xf32, #tpu.memory_space<vmem>>, vector<1x256xf32>
    %5 = vector.broadcast %4 : vector<1x256xf32> to vector<8x256xf32>
    %6 = arith.addf %3, %5 : vector<8x256xf32>
    %cst_5 = arith.constant 0.000000e+00 : f32
    %7 = vector.broadcast %cst_5 : f32 to vector<8x256xf32>
    %8 = arith.cmpf oge, %6, %7 : vector<8x256xf32>
    %cst_6 = arith.constant 0.00999999977 : f32
    %9 = vector.broadcast %cst_6 : f32 to vector<8x256xf32>
    %10 = arith.mulf %9, %6 : vector<8x256xf32>
    %11 = arith.select %8, %6, %10 : vector<8x256xi1>, vector<8x256xf32>
    %12 = arith.truncf %11 : vector<8x256xf32> to vector<8x256xbf16>
    %c0_7 = arith.constant 0 : index
    %c0_8 = arith.constant 0 : index
    %13 = vector.load %arg4[%c0_7, %c0_8] : memref<256x512xbf16, #tpu.memory_space<vmem>>, vector<256x512xbf16>
    %cst_9 = arith.constant dense<0.000000e+00> : vector<8x512xf32>
    %14 = tpu.matmul %12, %13, %cst_9 {dimension_numbers = #tpu.dot_dimension_numbers<[1], [0], [0], [1], [0, 0, 1, 1], [], []>} : vector<8x256xbf16>, vector<256x512xbf16>, vector<8x512xf32> -> vector<8x512xf32>
    %c0_10 = arith.constant 0 : index
    %c0_11 = arith.constant 0 : index
    %15 = vector.load %arg5[%c0_10, %c0_11] : memref<1x512xf32, #tpu.memory_space<vmem>>, vector<1x512xf32>
    %16 = vector.broadcast %15 : vector<1x512xf32> to vector<8x512xf32>
    %17 = arith.addf %14, %16 : vector<8x512xf32>
    %cst_12 = arith.constant 0.000000e+00 : f32
    %18 = vector.broadcast %cst_12 : f32 to vector<8x512xf32>
    %19 = arith.cmpf oge, %17, %18 : vector<8x512xf32>
    %cst_13 = arith.constant 0.00999999977 : f32
    %20 = vector.broadcast %cst_13 : f32 to vector<8x512xf32>
    %21 = arith.mulf %20, %17 : vector<8x512xf32>
    %22 = arith.select %19, %17, %21 : vector<8x512xi1>, vector<8x512xf32>
    %23 = arith.truncf %22 : vector<8x512xf32> to vector<8x512xbf16>
    %c0_14 = arith.constant 0 : index
    %c0_15 = arith.constant 0 : index
    %24 = vector.load %arg6[%c0_14, %c0_15] : memref<512x1024xbf16, #tpu.memory_space<vmem>>, vector<512x1024xbf16>
    %cst_16 = arith.constant dense<0.000000e+00> : vector<8x1024xf32>
    %25 = tpu.matmul %23, %24, %cst_16 {dimension_numbers = #tpu.dot_dimension_numbers<[1], [0], [0], [1], [0, 0, 1, 1], [], []>} : vector<8x512xbf16>, vector<512x1024xbf16>, vector<8x1024xf32> -> vector<8x1024xf32>
    %c0_17 = arith.constant 0 : index
    %c0_18 = arith.constant 0 : index
    %26 = vector.load %arg7[%c0_17, %c0_18] : memref<1x1024xf32, #tpu.memory_space<vmem>>, vector<1x1024xf32>
    %27 = vector.broadcast %26 : vector<1x1024xf32> to vector<8x1024xf32>
    %28 = arith.addf %25, %27 : vector<8x1024xf32>
    %cst_19 = arith.constant 0.000000e+00 : f32
    %29 = vector.broadcast %cst_19 : f32 to vector<8x1024xf32>
    %30 = arith.cmpf oge, %28, %29 : vector<8x1024xf32>
    %cst_20 = arith.constant 0.00999999977 : f32
    %31 = vector.broadcast %cst_20 : f32 to vector<8x1024xf32>
    %32 = arith.mulf %31, %28 : vector<8x1024xf32>
    %33 = arith.select %30, %28, %32 : vector<8x1024xi1>, vector<8x1024xf32>
    %34 = arith.truncf %33 : vector<8x1024xf32> to vector<8x1024xbf16>
    %c0_21 = arith.constant 0 : index
    %c0_22 = arith.constant 0 : index
    %35 = vector.load %arg8[%c0_21, %c0_22] : memref<1024x128xbf16, #tpu.memory_space<vmem>>, vector<1024x128xbf16>
    %cst_23 = arith.constant dense<0.000000e+00> : vector<8x128xf32>
    %36 = tpu.matmul %34, %35, %cst_23 {dimension_numbers = #tpu.dot_dimension_numbers<[1], [0], [0], [1], [0, 0, 1, 1], [], []>} : vector<8x1024xbf16>, vector<1024x128xbf16>, vector<8x128xf32> -> vector<8x128xf32>
    %c0_24 = arith.constant 0 : index
    %c0_25 = arith.constant 0 : index
    %37 = vector.load %arg9[%c0_24, %c0_25] : memref<1x128xf32, #tpu.memory_space<vmem>>, vector<1x128xf32>
    %38 = vector.broadcast %37 : vector<1x128xf32> to vector<8x128xf32>
    %39 = arith.addf %36, %38 : vector<8x128xf32>
    %40 = math.tanh %39 : vector<8x128xf32>
    %c0_26 = arith.constant 0 : index
    %c0_27 = arith.constant 0 : index
    %41 = vector.load %arg10[%c0_26, %c0_27] : memref<8x128xf32, #tpu.memory_space<vmem>>, vector<8x128xf32>
    tpu.vector_store %arg10[%c0_26, %c0_27], %40 {strides = array<i32>} : memref<8x128xf32, #tpu.memory_space<vmem>>, vector<8x128xf32>,
    return
  }
  func.func @transform_0(%arg0: i32) -> (i32, i32) {
    %c0_i32 = arith.constant 0 : i32
    %c0_i32_0 = arith.constant 0 : i32
    return %arg0, %c0_i32 : i32, i32
  }
  func.func @transform_1(%arg0: i32) -> (i32, i32) {
    %c0_i32 = arith.constant 0 : i32
    %c0_i32_0 = arith.constant 0 : i32
    %c0_i32_1 = arith.constant 0 : i32
    return %c0_i32, %c0_i32_0 : i32, i32
  }
  func.func @transform_2(%arg0: i32) -> (i32, i32) {
    %c0_i32 = arith.constant 0 : i32
    %c0_i32_0 = arith.constant 0 : i32
    %c0_i32_1 = arith.constant 0 : i32
    return %c0_i32, %c0_i32_0 : i32, i32
  }
  func.func @transform_3(%arg0: i32) -> (i32, i32) {
    %c0_i32 = arith.constant 0 : i32
    %c0_i32_0 = arith.constant 0 : i32
    %c0_i32_1 = arith.constant 0 : i32
    return %c0_i32, %c0_i32_0 : i32, i32
  }
  func.func @transform_4(%arg0: i32) -> (i32, i32) {
    %c0_i32 = arith.constant 0 : i32
    %c0_i32_0 = arith.constant 0 : i32
    %c0_i32_1 = arith.constant 0 : i32
    return %c0_i32, %c0_i32_0 : i32, i32
  }
  func.func @transform_5(%arg0: i32) -> (i32, i32) {
    %c0_i32 = arith.constant 0 : i32
    %c0_i32_0 = arith.constant 0 : i32
    %c0_i32_1 = arith.constant 0 : i32
    return %c0_i32, %c0_i32_0 : i32, i32
  }
  func.func @transform_6(%arg0: i32) -> (i32, i32) {
    %c0_i32 = arith.constant 0 : i32
    %c0_i32_0 = arith.constant 0 : i32
    %c0_i32_1 = arith.constant 0 : i32
    return %c0_i32, %c0_i32_0 : i32, i32
  }
  func.func @transform_7(%arg0: i32) -> (i32, i32) {
    %c0_i32 = arith.constant 0 : i32
    %c0_i32_0 = arith.constant 0 : i32
    %c0_i32_1 = arith.constant 0 : i32
    return %c0_i32, %c0_i32_0 : i32, i32
  }
  func.func @transform_8(%arg0: i32) -> (i32, i32) {
    %c0_i32 = arith.constant 0 : i32
    %c0_i32_0 = arith.constant 0 : i32
    %c0_i32_1 = arith.constant 0 : i32
    return %c0_i32, %c0_i32_0 : i32, i32
  }
  func.func @transform_9(%arg0: i32) -> (i32, i32) {
    %c0_i32 = arith.constant 0 : i32
    %c0_i32_0 = arith.constant 0 : i32
    return %arg0, %c0_i32 : i32, i32
  }
}

</mosaic_0001>

<bundles_post_ra>
// kernel: vanilla_generator_forward.1
= control target key start
LH: loop header
LB: loop body
LE: loop exit
PB: predicated region body
PF: predicated region fallthrough
CT: control target
= control target key end

     0   :  { %14 = vsyncpa [#allocation3], 0  ;;  %s8252_s0 = inlined_call_operand.vmem [shape: f32[16,128], index: 0, kind: input, shape index: {}]   ;;  %s8253_s1 = inlined_call_operand.vmem [shape: bf16[128,256], index: 1, kind: input, shape index: {}]   ;;  %s8254_s2 = inlined_call_operand.vmem [shape: f32[1,256], index: 2, kind: input, shape index: {}]   ;;  %s8255_s3 = inlined_call_operand.vmem [shape: bf16[256,512], index: 3, kind: input, shape index: {}]   ;;  %s8256_s4 = inlined_call_operand.vmem [shape: f32[1,512], index: 4, kind: input, shape index: {}]   ;;  %s8257_s5 = inlined_call_operand.vmem [shape: bf16[512,1024], index: 5, kind: input, shape index: {}]   ;;  %s8258_s6 = inlined_call_operand.vmem [shape: f32[1,1024], index: 6, kind: input, shape index: {}]   ;;  %s8259_s7 = inlined_call_operand.vmem [shape: bf16[1024,128], index: 7, kind: input, shape index: {}]   ;;  %s8260_s8 = inlined_call_operand.vmem [shape: f32[1,128], index: 8, kind: input, shape index: {}]   ;;  %s8261_s9 = inlined_call_operand.hbm [shape: f32[16,128], index: 9, kind: output, shape index: {}]  }
   0x1   :  { %16 = vsyncpa [#allocation3 + $0x1], 0  ;;  %s5845_s30 = smov 0   ;;  %s5847_s10 = smov 0  }
   0x2   :  { %s5849_s11 = smov 0   ;;  %s5851_s12 = smov 0  }
   0x3 LB: > { %8263 = sst [smem:[#allocation5_spill]] %s5789_s11  ;;  %s5866_s13 = sadd.s32 4294967295, %s5793_s12   ;;  %s5793_s12 = sphi %s5851_s12, %s8272_s12   ;;  %s5789_s11 = sphi %s5849_s11, %s8271_s11   ;;  %s5785_s10 = sphi %s5847_s10, %s8270_s10   ;;  %s5781_s30 = sphi %s5845_s30, %s8269_s30  }
   0x4   : > { %s3679_s14 = sadd.s32 4294967294, %s5793_s12   ;;  %s5870_s15 = sadd.s32 1, %s5793_s12  }
   0x5   : > { %s223_s16 = sadd.s32 1, %s5789_s11  ;;  %s220_s17 = ssub.s32 %s5793_s12, %s5870_s15 }
   0x6   : > { %p233_p0 = scmp.ne.s32.totalorder %s5789_s11, %s5785_s10  ;;  %p221_p1 = scmp.eq.s32.totalorder %s220_s17, 0 }
   0x7   : > { %p234_p2 = scmp.eq.s32.totalorder %s5866_s13, 1  ;;  %p239_p3 = scmp.ne.s32.totalorder %s5785_s10, %s5781_s30 }
   0x8   : > { %p240_p4 = scmp.eq.s32.totalorder %s3679_s14, 1  ;;  %p3682_p7 = scmp.ge.s32.totalorder %s5793_s12, 1 }
   0x9   : > { %s5881_s18 = scalar_select %p221_p1, %s5789_s11, %s223_s16  }
   0xa   : > { %p5883_p5 = por %p234_p2, %p233_p0  ;;  %p5887_p6 = por %p240_p4, %p239_p3 }
   0xb   : > { %8264 = sst [smem:[#allocation6_spill]] %s5881_s18  ;;  %p289_p8 = scmp.lt.s32.totalorder %s5793_s12, 3 }
   0xd   : > { %p290_p9 = pnand %p3682_p7, %p289_p8 }
   0xe   : > { %p324_p10 = scmp.lt.s32.totalorder (!%p290_p9), %s5866_s13, 1  ;;  %s5286_s27 = sshll.u32 (!%p290_p9), %s5866_s13, 3 }
   0xf   : > { %293 = sbr.rel (%p290_p9) target bundleno = 809 (0x329), region = 56  ;;  %s3615_s14 = scalar_lea.hbm (!%p290_p9), %s8261_s9, %s5286_s27 }
  0x10   : > { %s5751_s23 = scalar_lea.hbm (!%p290_p9), %s8261_s9, 16 }
  0x14   : > { %v3743_v0 = vld [vmem:[%s8253_s1 + $0x70] sm:$0xf]  ;;  %v5304_v1 = vld [vmem:[%s8253_s1 + $0x74] sm:$0xf0]  ;;  %v5303_v2 = vld [vmem:[%s8253_s1 + $0x74] sm:$0xf] }
  0x15   : > { %v3744_v3 = vor.u32 %v5304_v1, %v3743_v0  ;;  %v3745_v4 = vld [vmem:[%s8253_s1 + $0x78] sm:$0xf0]  ;;  %v3735_v5 = vld [vmem:[%s8253_s1 + $0x60] sm:$0xf]  ;;  %v5302_v6 = vld [vmem:[%s8253_s1 + $0x64] sm:$0xf0] }
  0x16   : > { %v3748_v7 = vor.u32 %v5303_v2, %v3745_v4  ;;  %v5301_v8 = vld [vmem:[%s8253_s1 + $0x64] sm:$0xf]  ;;  %v3737_v9 = vld [vmem:[%s8253_s1 + $0x68] sm:$0xf0]  ;;  %v3736_v10 = vor.u32 %v5302_v6, %v3735_v5  ;;  %v3727_v12 = vld [vmem:[%s8253_s1 + $0x50] sm:$0xf] }
  0x17   : > { %432 = vmatpush.bf16.msra.mxu0 %v3744_v3  ;;  %v3740_v11 = vor.u32 %v5301_v8, %v3737_v9  ;;  %v5300_v13 = vld [vmem:[%s8253_s1 + $0x54] sm:$0xf0]  ;;  %v5299_v14 = vld [vmem:[%s8253_s1 + $0x54] sm:$0xf]  ;;  %v3729_v15 = vld [vmem:[%s8253_s1 + $0x58] sm:$0xf0] }
  0x18   : > { %445 = vmatpush.bf16.msra.mxu1 %v3748_v7  ;;  %v3728_v16 = vor.u32 %v5300_v13, %v3727_v12  ;;  %v3732_v17 = vor.u32 %v5299_v14, %v3729_v15  ;;  %v3719_v18 = vld [vmem:[%s8253_s1 + $0x40] sm:$0xf]  ;;  %v5298_v19 = vld [vmem:[%s8253_s1 + $0x44] sm:$0xf0]  ;;  %v5297_v20 = vld [vmem:[%s8253_s1 + $0x44] sm:$0xf] }
  0x19   : > { %v3721_v21 = vld [vmem:[%s8253_s1 + $0x48] sm:$0xf0]  ;;  %v3720_v22 = vor.u32 %v5298_v19, %v3719_v18  ;;  %v3863_v23 = vld [vmem:[%s8255_s3 + $0xe0] sm:$0xf]  ;;  %v5335_v24 = vld [vmem:[%s8255_s3 + $0xec] sm:$0xf0] }
  0x1a   : > { %v3991_v25 = vld [vmem:[%s8255_s3 + $0x1e0] sm:$0xf]  ;;  %v3724_v26 = vor.u32 %v5297_v20, %v3721_v21  ;;  %v3711_v27 = vld [vmem:[%s8253_s1 + $0x30] sm:$0xf]  ;;  %v5296_v28 = vld [vmem:[%s8253_s1 + $0x34] sm:$0xf0]  ;;  %v3864_v29 = vor.u32 %v5335_v24, %v3863_v23 }
  0x1b   : > { %433 = vmatpush.bf16.msra.mxu0 %v3736_v10  ;;  %v5367_v30 = vld [vmem:[%s8255_s3 + $0x1ec] sm:$0xf0]  ;;  %v5295_v31 = vld [vmem:[%s8253_s1 + $0x34] sm:$0xf]  ;;  %v3713_v32 = vld [vmem:[%s8253_s1 + $0x38] sm:$0xf0]  ;;  %v3712_v36 = vor.u32 %v5296_v28, %v3711_v27 }
  0x1c   : > { %446 = vmatpush.bf16.msra.mxu1 %v3740_v11  ;;  %v3992_v33 = vor.u32 %v5367_v30, %v3991_v25  ;;  %860 = vmatpush.bf16.msra.mxu2 %v3864_v29  ;;  %v3847_v34 = vld [vmem:[%s8255_s3 + $0xc0] sm:$0xf]  ;;  %v5331_v35 = vld [vmem:[%s8255_s3 + $0xcc] sm:$0xf0]  ;;  %v3716_v41 = vor.u32 %v5295_v31, %v3713_v32  ;;  %v5294_v42 = vld [vmem:[%s8253_s1 + $0x24] sm:$0xf0] }
  0x1d   : > { %v3703_v37 = vld [vmem:[%s8253_s1 + $0x20] sm:$0xf]  ;;  %v3848_v38 = vor.u32 %v5331_v35, %v3847_v34  ;;  %v5363_v40 = vld [vmem:[%s8255_s3 + $0x1cc] sm:$0xf0]  ;;  %v5293_v43 = vld [vmem:[%s8253_s1 + $0x24] sm:$0xf] }
  0x1e   : > { %873 = vmatpush.bf16.msra.mxu3 %v3992_v33  ;;  %v3975_v39 = vld [vmem:[%s8255_s3 + $0x1c0] sm:$0xf]  ;;  %v3705_v44 = vld [vmem:[%s8253_s1 + $0x28] sm:$0xf0]  ;;  %s5993_s25 = scalar_select %p324_p10, %s5866_s13, 1  ;;  %v3704_v51 = vor.u32 %v5294_v42, %v3703_v37 }
  0x1f   : > { %434 = vmatpush.bf16.msra.mxu0 %v3728_v16  ;;  %v3976_v45 = vor.u32 %v5363_v40, %v3975_v39  ;;  %v3831_v46 = vld [vmem:[%s8255_s3 + $0xa0] sm:$0xf]  ;;  %v5327_v47 = vld [vmem:[%s8255_s3 + $0xac] sm:$0xf0]  ;;  %v5292_v53 = vld [vmem:[%s8253_s1 + $0x14] sm:$0xf0]  ;;  %v3708_v56 = vor.u32 %v5293_v43, %v3705_v44 }
  0x20   : > { %447 = vmatpush.bf16.msra.mxu1 %v3732_v17  ;;  %861 = vmatpush.bf16.msra.mxu2 %v3848_v38  ;;  %v3832_v48 = vor.u32 %v5327_v47, %v3831_v46  ;;  %v3959_v49 = vld [vmem:[%s8255_s3 + $0x1a0] sm:$0xf]  ;;  %v5359_v50 = vld [vmem:[%s8255_s3 + $0x1ac] sm:$0xf0]  ;;  %v5291_v54 = vld [vmem:[%s8253_s1 + $0x14] sm:$0xf] }
  0x21   : > { %v3695_v52 = vld [vmem:[%s8253_s1 + $0x10] sm:$0xf]  ;;  %v3960_v55 = vor.u32 %v5359_v50, %v3959_v49  ;;  %v3815_v57 = vld [vmem:[%s8255_s3 + $0x80] sm:$0xf]  ;;  %v3697_v60 = vld [vmem:[%s8253_s1 + $0x18] sm:$0xf0] }
  0x22   : > { %874 = vmatpush.bf16.msra.mxu3 %v3976_v45  ;;  %v5323_v58 = vld [vmem:[%s8255_s3 + $0x8c] sm:$0xf0]  ;;  %v3943_v59 = vld [vmem:[%s8255_s3 + $0x180] sm:$0xf]  ;;  %s3684_s26 = sshll.u32 %s5993_s25, 3  ;;  %v3696_v0 = vor.u32 %v5292_v53, %v3695_v52  ;;  %v3700_v5 = vor.u32 %v5291_v54, %v3697_v60  ;;  %s3619_s25 = sshll.u32 %s3615_s14, 4  ;;  %s3620_s25 = int_to_ptr.hbm [resolvable:$true] %s3619_s25 }
  0x23   : > { %435 = vmatpush.bf16.msra.mxu0 %v3720_v22  ;;  %v5355_v61 = vld [vmem:[%s8255_s3 + $0x18c] sm:$0xf0]  ;;  %v3687_v62 = vld [vmem:[%s8253_s1] sm:$0xf]  ;;  %v3816_v63 = vor.u32 %v5323_v58, %v3815_v57  ;;  %v5290_v1 = vld [vmem:[%s8253_s1 + $0x4] sm:$0xf0]  ;;  %s327_s28 = scalar_lea.vmem %s8252_s0, %s3684_s26 }
  0x24   : > { %448 = vmatpush.bf16.msra.mxu1 %v3724_v26  ;;  %862 = vmatpush.bf16.msra.mxu2 %v3832_v48  ;;  %v3944_v2 = vor.u32 %v5355_v61, %v3943_v59  ;;  %v3799_v3 = vld [vmem:[%s8255_s3 + $0x60] sm:$0xf]  ;;  %v5319_v4 = vld [vmem:[%s8255_s3 + $0x6c] sm:$0xf0]  ;;  %v5289_v6 = vld [vmem:[%s8253_s1 + $0x4] sm:$0xf]  ;;  %v3688_v15 = vor.u32 %v5290_v1, %v3687_v62 }
  0x25   : > { %v3927_v7 = vld [vmem:[%s8255_s3 + $0x160] sm:$0xf]  ;;  %v5351_v8 = vld [vmem:[%s8255_s3 + $0x16c] sm:$0xf0]  ;;  %v3689_v9 = vld [vmem:[%s8253_s1 + $0x8] sm:$0xf0]  ;;  %v3800_v14 = vor.u32 %v5319_v4, %v3799_v3 }
  0x26   : > { %875 = vmatpush.bf16.msra.mxu3 %v3960_v55  ;;  %v5333_v10 = vld [vmem:[%s8255_s3 + $0xe4] sm:$0xf]  ;;  %v3865_v11 = vld [vmem:[%s8255_s3 + $0xf0] sm:$0xf0]  ;;  %v3928_v17 = vor.u32 %v5351_v8, %v3927_v7  ;;  %v3783_v18 = vld [vmem:[%s8255_s3 + $0x40] sm:$0xf]  ;;  %v3692_v20 = vor.u32 %v5289_v6, %v3689_v9 }
  0x27   : > { %436 = vmatpush.bf16.msra.mxu0 %v3712_v36  ;;  %v5365_v12 = vld [vmem:[%s8255_s3 + $0x1e4] sm:$0xf]  ;;  %v3993_v13 = vld [vmem:[%s8255_s3 + $0x1f0] sm:$0xf0]  ;;  %v5315_v19 = vld [vmem:[%s8255_s3 + $0x4c] sm:$0xf0]  ;;  %v3868_v21 = vor.u32 %v5333_v10, %v3865_v11 }
  0x28   : > { %449 = vmatpush.bf16.msra.mxu1 %v3716_v41  ;;  %863 = vmatpush.bf16.msra.mxu2 %v3816_v63  ;;  %v328_v16 = vld [vmem:[%s327_s28] sm:$0xff]  ;;  %v5347_v23 = vld [vmem:[%s8255_s3 + $0x14c] sm:$0xf0]  ;;  %v3996_v24 = vor.u32 %v5365_v12, %v3993_v13  ;;  %v3849_v26 = vld [vmem:[%s8255_s3 + $0xd0] sm:$0xf0]  ;;  %v3784_v30 = vor.u32 %v5315_v19, %v3783_v18  ;;  %s321_s26 = sand.u32 1, %s5785_s10  }
  0x29   : > { %v3911_v22 = vld [vmem:[%s8255_s3 + $0x140] sm:$0xf]  ;;  %v5329_v25 = vld [vmem:[%s8255_s3 + $0xc4] sm:$0xf]  ;;  %v329_v27 = vpack.c.bf16 %v328_v16, %v328_v16  ;;  %v3977_v29 = vld [vmem:[%s8255_s3 + $0x1d0] sm:$0xf0] }
  0x2a   : > { %876 = vmatpush.bf16.msra.mxu3 %v3944_v2  ;;  %v5361_v28 = vld [vmem:[%s8255_s3 + $0x1c4] sm:$0xf]  ;;  %v3912_v31 = vor.u32 %v5347_v23, %v3911_v22  ;;  %v3767_v32 = vld [vmem:[%s8255_s3 + $0x20] sm:$0xf]  ;;  %v5311_v33 = vld [vmem:[%s8255_s3 + $0x2c] sm:$0xf0]  ;;  %v3852_v34 = vor.u32 %v5329_v25, %v3849_v26 }
  0x2b   : > { %437 = vmatpush.bf16.msra.mxu0 %v3704_v51  ;;  %v3895_v35 = vld [vmem:[%s8255_s3 + $0x120] sm:$0xf]  ;;  %v5343_v36 = vld [vmem:[%s8255_s3 + $0x12c] sm:$0xf0]  ;;  %v3980_v37 = vor.u32 %v5361_v28, %v3977_v29  ;;  %v5325_v38 = vld [vmem:[%s8255_s3 + $0xa4] sm:$0xf]  ;;  %v3768_v42 = vor.u32 %v5311_v33, %v3767_v32 }
  0x2c   : > { %450 = vmatpush.bf16.msra.mxu1 %v3708_v56  ;;  %864 = vmatpush.bf16.msra.mxu2 %v3800_v14  ;;  %v3833_v39 = vld [vmem:[%s8255_s3 + $0xb0] sm:$0xf0]  ;;  %v5357_v40 = vld [vmem:[%s8255_s3 + $0x1a4] sm:$0xf]  ;;  %v3896_v44 = vor.u32 %v5343_v36, %v3895_v35  ;;  %v3751_v45 = vld [vmem:[%s8255_s3] sm:$0xf] }
  0x2d   : > { %v3961_v41 = vld [vmem:[%s8255_s3 + $0x1b0] sm:$0xf0]  ;;  %v5321_v43 = vld [vmem:[%s8255_s3 + $0x84] sm:$0xf]  ;;  %v5307_v46 = vld [vmem:[%s8255_s3 + $0xc] sm:$0xf0]  ;;  %v3836_v48 = vor.u32 %v5325_v38, %v3833_v39 }
  0x2e   : > { %877 = vmatpush.bf16.msra.mxu3 %v3928_v17  ;;  %v3879_v47 = vld [vmem:[%s8255_s3 + $0x100] sm:$0xf]  ;;  %v5339_v49 = vld [vmem:[%s8255_s3 + $0x10c] sm:$0xf0]  ;;  %v3871_v50 = vld [vmem:[%s8255_s3 + $0xe8] sm:$0xf]  ;;  %v3964_v52 = vor.u32 %v5357_v40, %v3961_v41  ;;  %v3752_v58 = vor.u32 %v5307_v46, %v3751_v45 }
  0x2f   : > { %438 = vmatpush.bf16.msra.mxu0 %v3696_v0  ;;  %v5336_v51 = vld [vmem:[%s8255_s3 + $0xf4] sm:$0xf0]  ;;  %v3817_v53 = vld [vmem:[%s8255_s3 + $0x90] sm:$0xf0]  ;;  %v3999_v54 = vld [vmem:[%s8255_s3 + $0x1e8] sm:$0xf]  ;;  %v3880_v59 = vor.u32 %v5339_v49, %v3879_v47 }
  0x30   : > { %451 = vmatpush.bf16.msra.mxu1 %v3700_v5  ;;  %865 = vmatpush.bf16.msra.mxu2 %v3784_v30  ;;  %v5368_v55 = vld [vmem:[%s8255_s3 + $0x1f4] sm:$0xf0]  ;;  %v5353_v56 = vld [vmem:[%s8255_s3 + $0x184] sm:$0xf]  ;;  %v3945_v57 = vld [vmem:[%s8255_s3 + $0x190] sm:$0xf0]  ;;  %v3872_v60 = vor.u32 %v5336_v51, %v3871_v50  ;;  %v3820_v61 = vor.u32 %v5321_v43, %v3817_v53 }
  0x31   : > { %v5317_v62 = vld [vmem:[%s8255_s3 + $0x64] sm:$0xf]  ;;  %v4000_v63 = vor.u32 %v5368_v55, %v3999_v54  ;;  %v3855_v0 = vld [vmem:[%s8255_s3 + $0xc8] sm:$0xf]  ;;  %v5332_v1 = vld [vmem:[%s8255_s3 + $0xd4] sm:$0xf0]  ;;  %v3948_v2 = vor.u32 %v5353_v56, %v3945_v57 }
  0x32   : > { %878 = vmatpush.bf16.msra.mxu3 %v3912_v31  ;;  %v3801_v3 = vld [vmem:[%s8255_s3 + $0x70] sm:$0xf0]  ;;  %v3983_v4 = vld [vmem:[%s8255_s3 + $0x1c8] sm:$0xf]  ;;  %v5364_v5 = vld [vmem:[%s8255_s3 + $0x1d4] sm:$0xf0]  ;;  %v3856_v8 = vor.u32 %v5332_v1, %v3855_v0 }
  0x33   : > { %439 = vmatpush.bf16.msra.mxu0 %v3688_v15  ;;  %v5349_v6 = vld [vmem:[%s8255_s3 + $0x164] sm:$0xf]  ;;  %v3929_v7 = vld [vmem:[%s8255_s3 + $0x170] sm:$0xf0]  ;;  %v3804_v9 = vor.u32 %v5317_v62, %v3801_v3  ;;  %v3984_v10 = vor.u32 %v5364_v5, %v3983_v4  ;;  %v5334_v28 = vld [vmem:[%s8255_s3 + $0xec] sm:$0xf] }
  0x34   : > { %452 = vmatpush.bf16.msra.mxu1 %v3692_v20  ;;  %866 = vmatpush.bf16.msra.mxu2 %v3768_v42  ;;  %v3932_v11 = vor.u32 %v5349_v6, %v3929_v7  ;;  %v5313_v12 = vld [vmem:[%s8255_s3 + $0x44] sm:$0xf]  ;;  %v3785_v13 = vld [vmem:[%s8255_s3 + $0x50] sm:$0xf0]  ;;  %v3873_v29 = vld [vmem:[%s8255_s3 + $0xf8] sm:$0xf0] }
  0x35   : > { %v5345_v14 = vld [vmem:[%s8255_s3 + $0x144] sm:$0xf]  ;;  %v3913_v15 = vld [vmem:[%s8255_s3 + $0x150] sm:$0xf0]  ;;  %v3788_v16 = vor.u32 %v5313_v12, %v3785_v13  ;;  %v5366_v30 = vld [vmem:[%s8255_s3 + $0x1ec] sm:$0xf] }
  0x36   : > { %440 = vmatmul.bf16.vlgmr.msra.gmra.mxu0 %v329_v27  ;;  %879 = vmatpush.bf16.msra.mxu3 %v3896_v44  ;;  %v3916_v17 = vor.u32 %v5345_v14, %v3913_v15  ;;  %v5309_v18 = vld [vmem:[%s8255_s3 + $0x24] sm:$0xf]  ;;  %v3769_v19 = vld [vmem:[%s8255_s3 + $0x30] sm:$0xf0]  ;;  %v4001_v31 = vld [vmem:[%s8255_s3 + $0x1f8] sm:$0xf0] }
  0x37   : > { %886 = vmatpush.bf16.msrb.mxu0 %v3868_v21  ;;  %453 = vmatmul.bf16.vlgmr.msra.gmra.mxu1 %v329_v27  ;;  %v5341_v20 = vld [vmem:[%s8255_s3 + $0x124] sm:$0xf]  ;;  %v3897_v21 = vld [vmem:[%s8255_s3 + $0x130] sm:$0xf0]  ;;  %v3772_v22 = vor.u32 %v5309_v18, %v3769_v19  ;;  %v4004_v35 = vor.u32 %v5366_v30, %v4001_v31  ;;  %v5330_v36 = vld [vmem:[%s8255_s3 + $0xcc] sm:$0xf] }
  0x38   : > { %899 = vmatpush.bf16.msrb.mxu1 %v3996_v24  ;;  %867 = vmatpush.bf16.msra.mxu2 %v3752_v58  ;;  %v3900_v23 = vor.u32 %v5341_v20, %v3897_v21  ;;  %v5305_v24 = vld [vmem:[%s8255_s3 + $0x4] sm:$0xf]  ;;  %v3753_v25 = vld [vmem:[%s8255_s3 + $0x10] sm:$0xf0]  ;;  %v5362_v38 = vld [vmem:[%s8255_s3 + $0x1cc] sm:$0xf] }
  0x39   : > { %v5337_v26 = vld [vmem:[%s8255_s3 + $0x104] sm:$0xf]  ;;  %v3881_v27 = vld [vmem:[%s8255_s3 + $0x110] sm:$0xf0]  ;;  %v3756_v32 = vor.u32 %v5305_v24, %v3753_v25  ;;  %v3985_v39 = vld [vmem:[%s8255_s3 + $0x1d8] sm:$0xf0] }
  0x3a   : > { %880 = vmatpush.bf16.msra.mxu3 %v3880_v59  ;;  %v3884_v33 = vor.u32 %v5337_v26, %v3881_v27  ;;  %v3988_v41 = vor.u32 %v5362_v38, %v3985_v39  ;;  %v3839_v42 = vld [vmem:[%s8255_s3 + $0xa8] sm:$0xf]  ;;  %v5328_v43 = vld [vmem:[%s8255_s3 + $0xb4] sm:$0xf0]  ;;  %v5326_v47 = vld [vmem:[%s8255_s3 + $0xac] sm:$0xf] }
  0x3b   : > { %887 = vmatpush.bf16.msrb.mxu0 %v3852_v34  ;;  %v3876_v34 = vor.u32 %v5334_v28, %v3873_v29  ;;  %v3967_v44 = vld [vmem:[%s8255_s3 + $0x1a8] sm:$0xf]  ;;  %v3840_v45 = vor.u32 %v5328_v43, %v3839_v42  ;;  %v5360_v46 = vld [vmem:[%s8255_s3 + $0x1b4] sm:$0xf0]  ;;  %v3841_v49 = vld [vmem:[%s8255_s3 + $0xb8] sm:$0xf0] }
  0x3c   : > { %900 = vmatpush.bf16.msrb.mxu1 %v3980_v37  ;;  %912 = vmatpush.bf16.msrb.mxu2 %v3872_v60  ;;  %v3857_v37 = vld [vmem:[%s8255_s3 + $0xd8] sm:$0xf0]  ;;  %v5358_v50 = vld [vmem:[%s8255_s3 + $0x1ac] sm:$0xf]  ;;  %v3823_v54 = vld [vmem:[%s8255_s3 + $0x88] sm:$0xf] }
  0x3d   : > { %v3860_v40 = vor.u32 %v5330_v36, %v3857_v37  ;;  %v3969_v51 = vld [vmem:[%s8255_s3 + $0x1b8] sm:$0xf0]  ;;  %v5324_v55 = vld [vmem:[%s8255_s3 + $0x94] sm:$0xf0]  ;;  %v3951_v56 = vld [vmem:[%s8255_s3 + $0x188] sm:$0xf] }
  0x3e   : > { %925 = vmatpush.bf16.msrb.mxu3 %v4000_v63  ;;  %v3972_v53 = vor.u32 %v5358_v50, %v3969_v51  ;;  %v3824_v57 = vor.u32 %v5324_v55, %v3823_v54  ;;  %v5356_v58 = vld [vmem:[%s8255_s3 + $0x194] sm:$0xf0]  ;;  %v5322_v59 = vld [vmem:[%s8255_s3 + $0x8c] sm:$0xf]  ;;  %v3825_v60 = vld [vmem:[%s8255_s3 + $0x98] sm:$0xf0] }
  0x3f   : > { %888 = vmatpush.bf16.msrb.mxu0 %v3836_v48  ;;  %v3968_v48 = vor.u32 %v5360_v46, %v3967_v44  ;;  %v3828_v62 = vor.u32 %v5322_v59, %v3825_v60  ;;  %v5354_v63 = vld [vmem:[%s8255_s3 + $0x18c] sm:$0xf]  ;;  %v3953_v0 = vld [vmem:[%s8255_s3 + $0x198] sm:$0xf0]  ;;  %v5320_v3 = vld [vmem:[%s8255_s3 + $0x74] sm:$0xf0] }
  0x40   : > { %901 = vmatpush.bf16.msrb.mxu1 %v3964_v52  ;;  %913 = vmatpush.bf16.msrb.mxu2 %v3856_v8  ;;  %v3844_v52 = vor.u32 %v5326_v47, %v3841_v49  ;;  %v3956_v1 = vor.u32 %v5354_v63, %v3953_v0  ;;  %v3935_v4 = vld [vmem:[%s8255_s3 + $0x168] sm:$0xf]  ;;  %v5352_v6 = vld [vmem:[%s8255_s3 + $0x174] sm:$0xf0]  ;;  %v5318_v7 = vld [vmem:[%s8255_s3 + $0x6c] sm:$0xf] }
  0x41   : > { %v3809_v8 = vld [vmem:[%s8255_s3 + $0x78] sm:$0xf0]  ;;  %v3791_v13 = vld [vmem:[%s8255_s3 + $0x48] sm:$0xf]  ;;  %v5316_v15 = vld [vmem:[%s8255_s3 + $0x54] sm:$0xf0] }
  0x42   : > { %926 = vmatpush.bf16.msrb.mxu3 %v3984_v10  ;;  %v3812_v10 = vor.u32 %v5318_v7, %v3809_v8  ;;  %v3937_v12 = vld [vmem:[%s8255_s3 + $0x178] sm:$0xf0]  ;;  %v3792_v18 = vor.u32 %v5316_v15, %v3791_v13  ;;  %v5314_v20 = vld [vmem:[%s8255_s3 + $0x4c] sm:$0xf]  ;;  %v3775_v25 = vld [vmem:[%s8255_s3 + $0x28] sm:$0xf] }
  0x43   : > { %889 = vmatpush.bf16.msrb.mxu0 %v3820_v61  ;;  %v3952_v61 = vor.u32 %v5356_v58, %v3951_v56  ;;  %v3793_v21 = vld [vmem:[%s8255_s3 + $0x58] sm:$0xf0]  ;;  %v5312_v26 = vld [vmem:[%s8255_s3 + $0x34] sm:$0xf0]  ;;  %v3903_v28 = vld [vmem:[%s8255_s3 + $0x128] sm:$0xf] }
  0x44   : > { %902 = vmatpush.bf16.msrb.mxu1 %v3948_v2  ;;  %914 = vmatpush.bf16.msrb.mxu2 %v3840_v45  ;;  %v3807_v2 = vld [vmem:[%s8255_s3 + $0x68] sm:$0xf]  ;;  %v3921_v24 = vld [vmem:[%s8255_s3 + $0x158] sm:$0xf0]  ;;  %v5344_v29 = vld [vmem:[%s8255_s3 + $0x134] sm:$0xf0]  ;;  %v3776_v31 = vor.u32 %v5312_v26, %v3775_v25 }
  0x45   : > { %v3808_v5 = vor.u32 %v5320_v3, %v3807_v2  ;;  %v5310_v30 = vld [vmem:[%s8255_s3 + $0x2c] sm:$0xf]  ;;  %v3759_v36 = vld [vmem:[%s8255_s3 + $0x8] sm:$0xf]  ;;  %v5308_v37 = vld [vmem:[%s8255_s3 + $0x14] sm:$0xf0] }
  0x46   : > { %927 = vmatpush.bf16.msrb.mxu3 %v3968_v48  ;;  %v5306_v42 = vld [vmem:[%s8255_s3 + $0xc] sm:$0xf]  ;;  %v3761_v43 = vld [vmem:[%s8255_s3 + $0x18] sm:$0xf0]  ;;  %v3760_v46 = vor.u32 %v5308_v37, %v3759_v36  ;;  %v346_v50 = vld [vmem:[%s8254_s2] sm:$0x3] }
  0x47   : > { %890 = vmatpush.bf16.msrb.mxu0 %v3804_v9  ;;  %v3936_v9 = vor.u32 %v5352_v6, %v3935_v4  ;;  %v5338_v44 = vld [vmem:[%s8255_s3 + $0x10c] sm:$0xf]  ;;  %v3889_v45 = vld [vmem:[%s8255_s3 + $0x118] sm:$0xf0]  ;;  %v3764_v48 = vor.u32 %v5306_v42, %v3761_v43  ;;  %v348_v51 = vperm.slane %v346_v50, 0  ;;  %s3683_s24 = sshll.u32 %s321_s26, 3 }
  0x48   : > { %903 = vmatpush.bf16.msrb.mxu1 %v3932_v11  ;;  %915 = vmatpush.bf16.msrb.mxu2 %v3824_v57  ;;  %v5350_v11 = vld [vmem:[%s8255_s3 + $0x16c] sm:$0xf]  ;;  %v3892_v49 = vor.u32 %v5338_v44, %v3889_v45  ;;  %v4487_v56 = vld [vmem:[%s8257_s5 + $0x3c0] sm:$0xf]  ;;  %s323_s16 = scalar_lea.vmem [#allocation2], %s3683_s24  ;;  %s3605_s21 = scalar_lea.sflag [#allocation3], %s321_s26 }
  0x49   : > { %v3940_v14 = vor.u32 %v5350_v11, %v3937_v12  ;;  %v5493_v57 = vld [vmem:[%s8257_s5 + $0x3dc] sm:$0xf0]  ;;  %s3617_s17 = sshll.u32 %s323_s16, 4  ;;  %s5745_s22 = sshra.s32 %s3620_s25, 4  ;;  %s3618_s17 = int_to_ptr.vmem [resolvable:$true] %s3617_s17  ;;  %s5746_s22 = int_to_ptr.hbm [resolvable:$true] %s5745_s22 }
  0x4a   : > { %928 = vmatpush.bf16.msrb.mxu3 %v3952_v61  ;;  %v4231_v58 = vld [vmem:[%s8257_s5 + $0x1c0] sm:$0xf]  ;;  %v4488_v6 = vor.u32 %v5493_v57, %v4487_v56  ;;  %s5747_s13 = scalar_lea.hbm %s5746_s22, 8  ;;  %p5752_p0 = scmp.lt.s32.totalorder %s5746_s22, %s8261_s9 }
  0x4b   : > { %891 = vmatpush.bf16.msrb.mxu0 %v3788_v16  ;;  %v3919_v16 = vld [vmem:[%s8255_s3 + $0x148] sm:$0xf]  ;;  %v5429_v60 = vld [vmem:[%s8257_s5 + $0x1dc] sm:$0xf0]  ;;  %p5748_p11 = scmp.ne.s32.totalorder %s5746_s22, %s5747_s13  ;;  %p5753_p1 = scmp.lt.s32.totalorder %s5751_s23, %s5747_s13 }
  0x4c   : > { %904 = vmatpush.bf16.msrb.mxu1 %v3916_v17  ;;  %916 = vmatpush.bf16.msrb.mxu2 %v3808_v5  ;;  %v5348_v17 = vld [vmem:[%s8255_s3 + $0x154] sm:$0xf0]  ;;  %v4999_v61 = vld [vmem:[%s8257_s5 + $0x7c0] sm:$0xf] }
  0x4d   : > { %v3920_v19 = vor.u32 %v5348_v17, %v3919_v16  ;;  %v4743_v0 = vld [vmem:[%s8257_s5 + $0x5c0] sm:$0xf]  ;;  %p5749_p12 = pnand %p5748_p11, %p5883_p5  ;;  %p5754_p2 = por %p5753_p1, %p5752_p0 }
  0x4e   : > { %929 = vmatpush.bf16.msrb.mxu3 %v3936_v9  ;;  %v5557_v2 = vld [vmem:[%s8257_s5 + $0x5dc] sm:$0xf0]  ;;  %v4232_v9 = vor.u32 %v5429_v60, %v4231_v58 }
  0x4f   : > { %892 = vmatpush.bf16.msrb.mxu0 %v3772_v22  ;;  %v5346_v22 = vld [vmem:[%s8255_s3 + $0x14c] sm:$0xf]  ;;  %v4455_v7 = vld [vmem:[%s8257_s5 + $0x380] sm:$0xf]  ;;  %v4744_v15 = vor.u32 %v5557_v2, %v4743_v0  ;;  %p5750_p13 = pneg %p5749_p12 }
  0x50   : > { %905 = vmatpush.bf16.msrb.mxu1 %v3900_v23  ;;  %v3796_v23 = vor.u32 %v5314_v20, %v3793_v21  ;;  %v3924_v27 = vor.u32 %v5346_v22, %v3921_v24  ;;  %917 = vmatpush.bf16.msrb.mxu2 %v3792_v18  ;;  %v5485_v8 = vld [vmem:[%s8257_s5 + $0x39c] sm:$0xf0] }
  0x51   : > { %v4199_v11 = vld [vmem:[%s8257_s5 + $0x180] sm:$0xf]  ;;  %v4456_v21 = vor.u32 %v5485_v8, %v4455_v7  ;;  %p5755_p3 = pnand %p5754_p2, %p5750_p13 }
  0x52   : > { %930 = vmatpush.bf16.msrb.mxu3 %v3920_v19  ;;  %v5421_v12 = vld [vmem:[%s8257_s5 + $0x19c] sm:$0xf0] }
  0x53   : > { %893 = vmatpush.bf16.msrb.mxu0 %v3756_v32  ;;  %v3777_v32 = vld [vmem:[%s8255_s3 + $0x38] sm:$0xf0]  ;;  %v5613_v17 = vld [vmem:[%s8257_s5 + $0x79c] sm:$0xf0]  ;;  %v4200_v24 = vor.u32 %v5421_v12, %v4199_v11 }
  0x54   : > { %906 = vmatpush.bf16.msrb.mxu1 %v3884_v33  ;;  %v5342_v33 = vld [vmem:[%s8255_s3 + $0x12c] sm:$0xf]  ;;  %v3780_v38 = vor.u32 %v5310_v30, %v3777_v32  ;;  %918 = vmatpush.bf16.msrb.mxu2 %v3776_v31  ;;  %v4711_v18 = vld [vmem:[%s8257_s5 + $0x580] sm:$0xf] }
  0x55   : > { %v5549_v19 = vld [vmem:[%s8257_s5 + $0x59c] sm:$0xf0] }
  0x56   : > { %v4423_v22 = vld [vmem:[%s8257_s5 + $0x340] sm:$0xf] }
  0x57   : > { %938 = vmatpush.bf16.msra.mxu0 %v3876_v34  ;;  %v3905_v34 = vld [vmem:[%s8255_s3 + $0x138] sm:$0xf0]  ;;  %v4167_v25 = vld [vmem:[%s8257_s5 + $0x140] sm:$0xf] }
  0x58   : > { %951 = vmatpush.bf16.msra.mxu1 %v4004_v35  ;;  %v3904_v35 = vor.u32 %v5344_v29, %v3903_v28  ;;  %v3908_v39 = vor.u32 %v5342_v33, %v3905_v34  ;;  %919 = vmatpush.bf16.msrb.mxu2 %v3760_v46  ;;  %v5413_v26 = vld [vmem:[%s8257_s5 + $0x15c] sm:$0xf0]  ;;  %v4712_v29 = vor.u32 %v5549_v19, %v4711_v18 }
  0x59   : > { %v4935_v28 = vld [vmem:[%s8257_s5 + $0x740] sm:$0xf]  ;;  %v4168_v36 = vor.u32 %v5413_v26, %v4167_v25  ;;  %v4489_v26 = vld [vmem:[%s8257_s5 + $0x3e0] sm:$0xf0] }
  0x5a   : > { %931 = vmatpush.bf16.msrb.mxu3 %v3904_v35  ;;  %v5605_v30 = vld [vmem:[%s8257_s5 + $0x75c] sm:$0xf0] }
  0x5b   : > { %939 = vmatpush.bf16.msra.mxu0 %v3860_v40  ;;  %v3887_v40 = vld [vmem:[%s8255_s3 + $0x108] sm:$0xf]  ;;  %v4679_v31 = vld [vmem:[%s8257_s5 + $0x540] sm:$0xf] }
  0x5c   : > { %952 = vmatpush.bf16.msra.mxu1 %v3988_v41  ;;  %v5340_v41 = vld [vmem:[%s8255_s3 + $0x114] sm:$0xf0]  ;;  %v5541_v32 = vld [vmem:[%s8257_s5 + $0x55c] sm:$0xf0] }
  0x5d   : > { %v3888_v47 = vor.u32 %v5340_v41, %v3887_v40  ;;  %v4391_v34 = vld [vmem:[%s8257_s5 + $0x300] sm:$0xf]  ;;  %v4680_v41 = vor.u32 %v5541_v32, %v4679_v31 }
  0x5e   : > { %v5469_v35 = vld [vmem:[%s8257_s5 + $0x31c] sm:$0xf0] }
  0x5f   : > { %940 = vmatpush.bf16.msra.mxu0 %v3844_v52  ;;  %932 = vmatpush.bf16.msrb.mxu3 %v3888_v47  ;;  %v349_v52 = vperm.slane %v346_v50, 1  ;;  %v4135_v37 = vld [vmem:[%s8257_s5 + $0x100] sm:$0xf]  ;;  %v4392_v45 = vor.u32 %v5469_v35, %v4391_v34  ;;  %v5001_v34 = vld [vmem:[%s8257_s5 + $0x7e0] sm:$0xf0] }
  0x60   : > { %953 = vmatpush.bf16.msra.mxu1 %v3972_v53  ;;  %v4903_v40 = vld [vmem:[%s8257_s5 + $0x700] sm:$0xf] }
  0x61   : > { %v5597_v42 = vld [vmem:[%s8257_s5 + $0x71c] sm:$0xf0] }
  0x62   : > { %v4647_v43 = vld [vmem:[%s8257_s5 + $0x500] sm:$0xf] }
  0x63   : > { %941 = vmatpush.bf16.msra.mxu0 %v3828_v62  ;;  %v5621_v62 = vld [vmem:[%s8257_s5 + $0x7dc] sm:$0xf0] }
  0x64   : > { %954 = vmatpush.bf16.msra.mxu1 %v3956_v1  ;;  %v5000_v13 = vor.u32 %v5621_v62, %v4999_v61  ;;  %v5533_v44 = vld [vmem:[%s8257_s5 + $0x51c] sm:$0xf0] }
  0x65   : > { %v4359_v46 = vld [vmem:[%s8257_s5 + $0x2c0] sm:$0xf] }
  0x66   : > { %v5461_v47 = vld [vmem:[%s8257_s5 + $0x2dc] sm:$0xf0] }
  0x67   : > { %942 = vmatpush.bf16.msra.mxu0 %v3812_v10  ;;  %v5397_v50 = vld [vmem:[%s8257_s5 + $0xdc] sm:$0xf0]  ;;  %v4360_v57 = vor.u32 %v5461_v47, %v4359_v46  ;;  %v4425_v46 = vld [vmem:[%s8257_s5 + $0x360] sm:$0xf0] }
  0x68   : > { %955 = vmatpush.bf16.msra.mxu1 %v3940_v14  ;;  %v4967_v14 = vld [vmem:[%s8257_s5 + $0x780] sm:$0xf]  ;;  %v5409_v47 = vld [vmem:[%s8257_s5 + $0x144] sm:$0xf] }
  0x69   : > { %v5525_v56 = vld [vmem:[%s8257_s5 + $0x4dc] sm:$0xf0] }
  0x6a   : > { %v4327_v58 = vld [vmem:[%s8257_s5 + $0x280] sm:$0xf] }
  0x6b   : > { %943 = vmatpush.bf16.msra.mxu0 %v3796_v23  ;;  %v5477_v23 = vld [vmem:[%s8257_s5 + $0x35c] sm:$0xf0] }
  0x6c   : > { %956 = vmatpush.bf16.msra.mxu1 %v3924_v27  ;;  %v4968_v27 = vor.u32 %v5613_v17, %v4967_v14  ;;  %v4424_v33 = vor.u32 %v5477_v23, %v4423_v22  ;;  %v4071_v61 = vld [vmem:[%s8257_s5 + $0x80] sm:$0xf] }
  0x6d   : > { %v5389_v62 = vld [vmem:[%s8257_s5 + $0x9c] sm:$0xf0] }
  0x6e   : > { %v4839_v0 = vld [vmem:[%s8257_s5 + $0x680] sm:$0xf]  ;;  %v4072_v8 = vor.u32 %v5389_v62, %v4071_v61  ;;  %v4329_v61 = vld [vmem:[%s8257_s5 + $0x2a0] sm:$0xf0] }
  0x6f   : > { %944 = vmatpush.bf16.msra.mxu0 %v3780_v38  ;;  %v5405_v38 = vld [vmem:[%s8257_s5 + $0x11c] sm:$0xf0]  ;;  %v5609_v62 = vld [vmem:[%s8257_s5 + $0x784] sm:$0xf] }
  0x70   : > { %957 = vmatpush.bf16.msra.mxu1 %v3908_v39  ;;  %v4936_v39 = vor.u32 %v5605_v30, %v4935_v28  ;;  %v5581_v2 = vld [vmem:[%s8257_s5 + $0x69c] sm:$0xf0]  ;;  %v4233_v28 = vld [vmem:[%s8257_s5 + $0x1e0] sm:$0xf0] }
  0x71   : > { %v5445_v7 = vld [vmem:[%s8257_s5 + $0x25c] sm:$0xf0]  ;;  %v4840_v11 = vor.u32 %v5581_v2, %v4839_v0  ;;  %v4969_v0 = vld [vmem:[%s8257_s5 + $0x7a0] sm:$0xf0] }
  0x72   : > { %v4807_v12 = vld [vmem:[%s8257_s5 + $0x640] sm:$0xf] }
  0x73   : > { %945 = vmatpush.bf16.msra.mxu0 %v3764_v48  ;;  %v4136_v48 = vor.u32 %v5405_v38, %v4135_v37  ;;  %v5573_v14 = vld [vmem:[%s8257_s5 + $0x65c] sm:$0xf0]  ;;  %v4457_v38 = vld [vmem:[%s8257_s5 + $0x3a0] sm:$0xf0] }
  0x74   : > { %958 = vmatpush.bf16.msra.mxu1 %v3892_v49  ;;  %v4103_v49 = vld [vmem:[%s8257_s5 + $0xc0] sm:$0xf] }
  0x75   : > { %v4104_v60 = vor.u32 %v5397_v50, %v4103_v49  ;;  %v4263_v18 = vld [vmem:[%s8257_s5 + $0x200] sm:$0xf]  ;;  %v5465_v50 = vld [vmem:[%s8257_s5 + $0x304] sm:$0xf] }
  0x76   : > { %v5437_v19 = vld [vmem:[%s8257_s5 + $0x21c] sm:$0xf0] }
  0x77   : > { %v4007_v22 = vld [vmem:[%s8257_s5] sm:$0xf]  ;;  %v4264_v31 = vor.u32 %v5437_v19, %v4263_v18  ;;  %v4073_v18 = vld [vmem:[%s8257_s5 + $0xa0] sm:$0xf0] }
  0x78   : > { %v5373_v23 = vld [vmem:[%s8257_s5 + $0x1c] sm:$0xf0]  ;;  %v5545_v19 = vld [vmem:[%s8257_s5 + $0x584] sm:$0xf] }
  0x79   : > { %v5565_v30 = vld [vmem:[%s8257_s5 + $0x61c] sm:$0xf0]  ;;  %v4008_v32 = vor.u32 %v5373_v23, %v4007_v22  ;;  %v5433_v23 = vld [vmem:[%s8257_s5 + $0x204] sm:$0xf] }
  0x7a   : > { %v5501_v2 = vld [vmem:[%s8257_s5 + $0x41c] sm:$0xf0] }
  0xb3   : > { %v441_v53 = vpop.f32.mrf.mxu0 }
  0xb4   : > { %v442_v54 = vadd.f32 %v441_v53, %v348_v51  ;;  %v454_v55 = vpop.f32.mrf.mxu1  ;;  %v4904_v51 = vor.u32 %v5597_v42, %v4903_v40  ;;  %v4648_v53 = vor.u32 %v5533_v44, %v4647_v43  ;;  %v4201_v40 = vld [vmem:[%s8257_s5 + $0x1a0] sm:$0xf0] }
  0xb5   : > { %v455_v59 = vadd.f32 %v454_v55, %v349_v52  ;;  %v4871_v52 = vld [vmem:[%s8257_s5 + $0x6c0] sm:$0xf]  ;;  %v5473_v44 = vld [vmem:[%s8257_s5 + $0x344] sm:$0xf] }
  0xb6   : > { %vm458_vm0 = vcmp.ge.f32.partialorder %v442_v54, 0.0  ;;  %v460_v63 = vmul.f32 0.01, %v442_v54  ;;  %v4615_v55 = vld [vmem:[%s8257_s5 + $0x4c0] sm:$0xf]  ;;  %v4428_v49 = vor.u32 %v5473_v44, %v4425_v46 }
  0xb7   : > { %vm459_vm1 = vcmp.ge.f32.partialorder %v455_v59, 0.0  ;;  %v461_v1 = vmul.f32 0.01, %v455_v59  ;;  %v5577_v44 = vld [vmem:[%s8257_s5 + $0x684] sm:$0xf] }
  0xb8   : > { %v462_v3 = vsel %vm458_vm0, %v442_v54, %v460_v63  ;;  %v5589_v54 = vld [vmem:[%s8257_s5 + $0x6dc] sm:$0xf0] }
  0xb9   : > { %v6410_v4 = vpack.c.bf16 %v462_v3, %v462_v3  ;;  %v463_v5 = vsel %vm459_vm1, %v455_v59, %v461_v1  ;;  %v5453_v59 = vld [vmem:[%s8257_s5 + $0x29c] sm:$0xf0]  ;;  %v4872_v63 = vor.u32 %v5589_v54, %v4871_v52  ;;  %v4616_v1 = vor.u32 %v5525_v56, %v4615_v55  ;;  %v4393_v52 = vld [vmem:[%s8257_s5 + $0x320] sm:$0xf0] }
  0xba   : > { %v6418_v10 = vpack.c.bf16 %v463_v5, %v463_v5  ;;  %v4583_v3 = vld [vmem:[%s8257_s5 + $0x480] sm:$0xf]  ;;  %v4137_v54 = vld [vmem:[%s8257_s5 + $0x120] sm:$0xf0]  ;;  %v4396_v55 = vor.u32 %v5465_v50, %v4393_v52 }
  0xbb   : > { %v443_v16 = vpop.f32.mrf.mxu0  ;;  %868 = vmatmul.bf16.vlgmr.msra.gmra.mxu2 %v6410_v4  ;;  %894 = vmatmul.bf16.vlgmr.msrb.gmra.mxu0 %v6410_v4  ;;  %v5517_v5 = vld [vmem:[%s8257_s5 + $0x49c] sm:$0xf0]  ;;  %v5569_v50 = vld [vmem:[%s8257_s5 + $0x644] sm:$0xf] }
  0xbc   : > { %v456_v20 = vpop.f32.mrf.mxu1  ;;  %881 = vmatmul.bf16.vlgmr.msra.gmra.mxu3 %v6418_v10  ;;  %907 = vmatmul.bf16.vlgmr.msrb.gmra.mxu1 %v6418_v10  ;;  %v5509_v16 = vld [vmem:[%s8257_s5 + $0x45c] sm:$0xf0] }
  0xbd   : > { %2547 = vmatpush.bf16.msra.mxu3 %v4488_v6  ;;  %2534 = vmatpush.bf16.msra.mxu2 %v4232_v9  ;;  %v4328_v6 = vor.u32 %v5453_v59, %v4327_v58  ;;  %v4039_v9 = vld [vmem:[%s8257_s5 + $0x40] sm:$0xf]  ;;  %v4361_v58 = vld [vmem:[%s8257_s5 + $0x2e0] sm:$0xf0] }
  0xbe   : > { %2573 = vmatpush.bf16.msrb.mxu1 %v5000_v13  ;;  %2560 = vmatpush.bf16.msrb.mxu0 %v4744_v15  ;;  %v4584_v13 = vor.u32 %v5517_v5, %v4583_v3  ;;  %v4551_v15 = vld [vmem:[%s8257_s5 + $0x440] sm:$0xf]  ;;  %v4972_v3 = vor.u32 %v5609_v62, %v4969_v0  ;;  %v5497_v0 = vld [vmem:[%s8257_s5 + $0x404] sm:$0xf] }
  0xbf   : > { %v4552_v25 = vor.u32 %v5509_v16, %v4551_v15  ;;  %v4937_v15 = vld [vmem:[%s8257_s5 + $0x760] sm:$0xf0] }
  0xc1   : > { %2548 = vmatpush.bf16.msra.mxu3 %v4456_v21  ;;  %2535 = vmatpush.bf16.msra.mxu2 %v4200_v24  ;;  %v5489_v21 = vld [vmem:[%s8257_s5 + $0x3c4] sm:$0xf]  ;;  %v4808_v24 = vor.u32 %v5573_v14, %v4807_v12 }
  0xc2   : > { %2574 = vmatpush.bf16.msrb.mxu1 %v4968_v27  ;;  %2561 = vmatpush.bf16.msrb.mxu0 %v4712_v29  ;;  %v5425_v27 = vld [vmem:[%s8257_s5 + $0x1c4] sm:$0xf]  ;;  %v4775_v29 = vld [vmem:[%s8257_s5 + $0x600] sm:$0xf]  ;;  %v4492_v35 = vor.u32 %v5489_v21, %v4489_v26 }
  0xc3   : > { %v4236_v37 = vor.u32 %v5425_v27, %v4233_v28  ;;  %v4297_v12 = vld [vmem:[%s8257_s5 + $0x260] sm:$0xf0] }
  0xc4   : > { %v4713_v21 = vld [vmem:[%s8257_s5 + $0x5a0] sm:$0xf0] }
  0xc5   : > { %2549 = vmatpush.bf16.msra.mxu3 %v4424_v33  ;;  %2536 = vmatpush.bf16.msra.mxu2 %v4168_v36  ;;  %v5617_v33 = vld [vmem:[%s8257_s5 + $0x7c4] sm:$0xf]  ;;  %v4716_v22 = vor.u32 %v5545_v19, %v4713_v21  ;;  %v5486_v19 = vld [vmem:[%s8257_s5 + $0x3a4] sm:$0xf0] }
  0xc6   : > { %2575 = vmatpush.bf16.msrb.mxu1 %v4936_v39  ;;  %2562 = vmatpush.bf16.msrb.mxu0 %v4680_v41  ;;  %v5481_v36 = vld [vmem:[%s8257_s5 + $0x384] sm:$0xf]  ;;  %v4776_v41 = vor.u32 %v5565_v30, %v4775_v29  ;;  %v5004_v42 = vor.u32 %v5617_v33, %v5001_v34 }
  0xc7   : > { %v5417_v39 = vld [vmem:[%s8257_s5 + $0x184] sm:$0xf]  ;;  %v4460_v43 = vor.u32 %v5481_v36, %v4457_v38 }
  0xc8   : > { %v4905_v27 = vld [vmem:[%s8257_s5 + $0x720] sm:$0xf0] }
  0xc9   : > { %2550 = vmatpush.bf16.msra.mxu3 %v4392_v45  ;;  %2537 = vmatpush.bf16.msra.mxu2 %v4136_v48  ;;  %v4204_v45 = vor.u32 %v5417_v39, %v4201_v40  ;;  %v4169_v48 = vld [vmem:[%s8257_s5 + $0x160] sm:$0xf0] }
  0xca   : > { %2576 = vmatpush.bf16.msrb.mxu1 %v4904_v51  ;;  %2563 = vmatpush.bf16.msrb.mxu0 %v4648_v53  ;;  %v4172_v51 = vor.u32 %v5409_v47, %v4169_v48  ;;  %v5401_v53 = vld [vmem:[%s8257_s5 + $0x104] sm:$0xf] }
  0xcb   : > { %920 = vmatmul.bf16.vlgmr.msrb.gmra.mxu2 %v6410_v4  ;;  %946 = vmatmul.bf16.vlgmr.msra.gmra.mxu0 %v6410_v4  ;;  %v4295_v4 = vld [vmem:[%s8257_s5 + $0x240] sm:$0xf]  ;;  %v4140_v56 = vor.u32 %v5401_v53, %v4137_v54  ;;  %v5377_v29 = vld [vmem:[%s8257_s5 + $0x44] sm:$0xf] }
  0xcc   : > { %933 = vmatmul.bf16.vlgmr.msrb.gmra.mxu3 %v6418_v10  ;;  %959 = vmatmul.bf16.vlgmr.msra.gmra.mxu1 %v6418_v10  ;;  %v5381_v10 = vld [vmem:[%s8257_s5 + $0x5c] sm:$0xf0]  ;;  %v4296_v17 = vor.u32 %v5445_v7, %v4295_v4  ;;  %v4105_v4 = vld [vmem:[%s8257_s5 + $0xe0] sm:$0xf0] }
  0xcd   : > { %2551 = vmatpush.bf16.msra.mxu3 %v4360_v57  ;;  %2538 = vmatpush.bf16.msra.mxu2 %v4104_v60  ;;  %v4040_v20 = vor.u32 %v5381_v10, %v4039_v9  ;;  %v5457_v57 = vld [vmem:[%s8257_s5 + $0x2c4] sm:$0xf] }
  0xce   : > { %2577 = vmatpush.bf16.msrb.mxu1 %v4872_v63  ;;  %2564 = vmatpush.bf16.msrb.mxu0 %v4616_v1  ;;  %v4364_v59 = vor.u32 %v5457_v57, %v4361_v58  ;;  %v5449_v60 = vld [vmem:[%s8257_s5 + $0x284] sm:$0xf]  ;;  %v4519_v1 = vld [vmem:[%s8257_s5 + $0x400] sm:$0xf] }
  0xcf   : > { %v4332_v63 = vor.u32 %v5449_v60, %v4329_v61  ;;  %v4520_v5 = vor.u32 %v5501_v2, %v4519_v1  ;;  %v5553_v7 = vld [vmem:[%s8257_s5 + $0x5c4] sm:$0xf]  ;;  %v6779_v61 = vld [vmem:[%s8256_s4] sm:$0xf] }
  0xd0   : > { %v4745_v9 = vld [vmem:[%s8257_s5 + $0x5e0] sm:$0xf0] }
  0xd1   : > { %2552 = vmatpush.bf16.msra.mxu3 %v4328_v6  ;;  %2539 = vmatpush.bf16.msra.mxu2 %v4072_v8  ;;  %v5393_v6 = vld [vmem:[%s8257_s5 + $0xc4] sm:$0xf]  ;;  %v4748_v10 = vor.u32 %v5553_v7, %v4745_v9  ;;  %v532_v7 = vperm.slane %v6779_v61, 0  ;;  %v5494_v9 = vld [vmem:[%s8257_s5 + $0x3e4] sm:$0xf0] }
  0xd2   : > { %2578 = vmatpush.bf16.msrb.mxu1 %v4840_v11  ;;  %2565 = vmatpush.bf16.msrb.mxu0 %v4584_v13  ;;  %v4108_v8 = vor.u32 %v5393_v6, %v4105_v4  ;;  %v5441_v11 = vld [vmem:[%s8257_s5 + $0x244] sm:$0xf] }
  0xd3   : > { %v5601_v13 = vld [vmem:[%s8257_s5 + $0x744] sm:$0xf]  ;;  %v4300_v14 = vor.u32 %v5441_v11, %v4297_v12 }
  0xd4   : > { %v4940_v16 = vor.u32 %v5601_v13, %v4937_v15  ;;  %v4041_v30 = vld [vmem:[%s8257_s5 + $0x60] sm:$0xf0] }
  0xd5   : > { %2553 = vmatpush.bf16.msra.mxu3 %v4296_v17  ;;  %2540 = vmatpush.bf16.msra.mxu2 %v4040_v20  ;;  %v5385_v17 = vld [vmem:[%s8257_s5 + $0x84] sm:$0xf] }
  0xd6   : > { %2579 = vmatpush.bf16.msrb.mxu1 %v4808_v24  ;;  %2566 = vmatpush.bf16.msrb.mxu0 %v4552_v25  ;;  %v4076_v20 = vor.u32 %v5385_v17, %v4073_v18  ;;  %v4265_v24 = vld [vmem:[%s8257_s5 + $0x220] sm:$0xf0]  ;;  %v4463_v18 = vld [vmem:[%s8257_s5 + $0x388] sm:$0xf] }
  0xd7   : > { %v5593_v25 = vld [vmem:[%s8257_s5 + $0x704] sm:$0xf]  ;;  %v4268_v26 = vor.u32 %v5433_v23, %v4265_v24  ;;  %v5430_v23 = vld [vmem:[%s8257_s5 + $0x1e4] sm:$0xf0] }
  0xd8   : > { %v4908_v28 = vor.u32 %v5593_v25, %v4905_v27  ;;  %v4681_v33 = vld [vmem:[%s8257_s5 + $0x560] sm:$0xf0]  ;;  %v4464_v25 = vor.u32 %v5486_v19, %v4463_v18  ;;  %v5478_v27 = vld [vmem:[%s8257_s5 + $0x364] sm:$0xf0] }
  0xd9   : > { %2554 = vmatpush.bf16.msra.mxu3 %v4264_v31  ;;  %2541 = vmatpush.bf16.msra.mxu2 %v4008_v32  ;;  %v5537_v31 = vld [vmem:[%s8257_s5 + $0x544] sm:$0xf]  ;;  %v4044_v32 = vor.u32 %v5377_v29, %v4041_v30  ;;  %v535_v29 = vperm.slane %v6779_v61, 3  ;;  %v5606_v18 = vld [vmem:[%s8257_s5 + $0x764] sm:$0xf0] }
  0xda   : > { %2580 = vmatpush.bf16.msrb.mxu1 %v4776_v41  ;;  %2567 = vmatpush.bf16.msrb.mxu0 %v4520_v5  ;;  %v4684_v34 = vor.u32 %v5537_v31, %v4681_v33  ;;  %v4873_v36 = vld [vmem:[%s8257_s5 + $0x6e0] sm:$0xf0]  ;;  %v4207_v33 = vld [vmem:[%s8257_s5 + $0x188] sm:$0xf] }
  0xdb   : > { %v5369_v38 = vld [vmem:[%s8257_s5 + $0x4] sm:$0xf] }
  0xdc   : > { %v4009_v39 = vld [vmem:[%s8257_s5 + $0x20] sm:$0xf0] }
  0xdd   : > { %2599 = vmatpush.bf16.msrb.mxu3 %v4492_v35  ;;  %2586 = vmatpush.bf16.msrb.mxu2 %v4236_v37  ;;  %v5585_v35 = vld [vmem:[%s8257_s5 + $0x6c4] sm:$0xf]  ;;  %v4012_v41 = vor.u32 %v5369_v38, %v4009_v39  ;;  %v4399_v38 = vld [vmem:[%s8257_s5 + $0x308] sm:$0xf] }
  0xde   : > { %2625 = vmatpush.bf16.msra.mxu1 %v5004_v42  ;;  %2612 = vmatpush.bf16.msra.mxu0 %v4748_v10  ;;  %v4876_v37 = vor.u32 %v5585_v35, %v4873_v36  ;;  %v5529_v40 = vld [vmem:[%s8257_s5 + $0x504] sm:$0xf]  ;;  %v5470_v39 = vld [vmem:[%s8257_s5 + $0x324] sm:$0xf0] }
  0xdf   : > { %v4649_v42 = vld [vmem:[%s8257_s5 + $0x520] sm:$0xf0] }
  0xe0   : > { %v5521_v47 = vld [vmem:[%s8257_s5 + $0x4c4] sm:$0xf] }
  0xe1   : > { %2600 = vmatpush.bf16.msrb.mxu3 %v4460_v43  ;;  %2587 = vmatpush.bf16.msrb.mxu2 %v4204_v45  ;;  %v4652_v43 = vor.u32 %v5529_v40, %v4649_v42  ;;  %v4841_v45 = vld [vmem:[%s8257_s5 + $0x6a0] sm:$0xf0] }
  0xe2   : > { %2626 = vmatpush.bf16.msra.mxu1 %v4972_v3  ;;  %2613 = vmatpush.bf16.msra.mxu0 %v4716_v22  ;;  %v4844_v46 = vor.u32 %v5577_v44, %v4841_v45  ;;  %v4617_v48 = vld [vmem:[%s8257_s5 + $0x4e0] sm:$0xf0]  ;;  %v4239_v22 = vld [vmem:[%s8257_s5 + $0x1c8] sm:$0xf] }
  0xe3   : > { %v5513_v53 = vld [vmem:[%s8257_s5 + $0x484] sm:$0xf]  ;;  %v4240_v30 = vor.u32 %v5430_v23, %v4239_v22  ;;  %v5414_v44 = vld [vmem:[%s8257_s5 + $0x164] sm:$0xf0] }
  0xe4   : > { %v4585_v54 = vld [vmem:[%s8257_s5 + $0x4a0] sm:$0xf0]  ;;  %v4079_v22 = vld [vmem:[%s8257_s5 + $0x88] sm:$0xf] }
  0xe5   : > { %2601 = vmatpush.bf16.msrb.mxu3 %v4428_v49  ;;  %2588 = vmatpush.bf16.msrb.mxu2 %v4172_v51  ;;  %v4620_v49 = vor.u32 %v5521_v47, %v4617_v48  ;;  %v4809_v51 = vld [vmem:[%s8257_s5 + $0x660] sm:$0xf0]  ;;  %v4400_v47 = vor.u32 %v5470_v39, %v4399_v38  ;;  %v4367_v48 = vld [vmem:[%s8257_s5 + $0x2c8] sm:$0xf]  ;;  %v5490_v38 = vld [vmem:[%s8257_s5 + $0x3cc] sm:$0xf] }
  0xe6   : > { %2627 = vmatpush.bf16.msra.mxu1 %v4940_v16  ;;  %2614 = vmatpush.bf16.msra.mxu0 %v4684_v34  ;;  %v4812_v52 = vor.u32 %v5569_v50, %v4809_v51  ;;  %v4777_v57 = vld [vmem:[%s8257_s5 + $0x620] sm:$0xf0]  ;;  %v5422_v34 = vld [vmem:[%s8257_s5 + $0x1a4] sm:$0xf0]  ;;  %v4497_v39 = vld [vmem:[%s8257_s5 + $0x3e8] sm:$0xf0] }
  0xe7   : > { %v4553_v60 = vld [vmem:[%s8257_s5 + $0x460] sm:$0xf0]  ;;  %v4208_v42 = vor.u32 %v5422_v34, %v4207_v33  ;;  %v5007_v50 = vld [vmem:[%s8257_s5 + $0x7c8] sm:$0xf] }
  0xe8   : > { %v4521_v1 = vld [vmem:[%s8257_s5 + $0x420] sm:$0xf0]  ;;  %v5622_v51 = vld [vmem:[%s8257_s5 + $0x7e4] sm:$0xf0] }
  0xe9   : > { %2602 = vmatpush.bf16.msrb.mxu3 %v4396_v55  ;;  %2589 = vmatpush.bf16.msrb.mxu2 %v4140_v56  ;;  %v4588_v55 = vor.u32 %v5513_v53, %v4585_v54  ;;  %v5561_v56 = vld [vmem:[%s8257_s5 + $0x604] sm:$0xf]  ;;  %v4524_v2 = vor.u32 %v5497_v0, %v4521_v1  ;;  %v5454_v1 = vld [vmem:[%s8257_s5 + $0x2a4] sm:$0xf0] }
  0xea   : > { %2628 = vmatpush.bf16.msra.mxu1 %v4908_v28  ;;  %2615 = vmatpush.bf16.msra.mxu0 %v4652_v43  ;;  %v4780_v58 = vor.u32 %v5561_v56, %v4777_v57  ;;  %v4175_v43 = vld [vmem:[%s8257_s5 + $0x148] sm:$0xf] }
  0xeb   : > { %v4176_v53 = vor.u32 %v5414_v44, %v4175_v43  ;;  %v5406_v56 = vld [vmem:[%s8257_s5 + $0x124] sm:$0xf0] }
  0xec   : > { %v5438_v33 = vld [vmem:[%s8257_s5 + $0x224] sm:$0xf0] }
  0xed   : > { %2603 = vmatpush.bf16.msrb.mxu3 %v4364_v59  ;;  %2590 = vmatpush.bf16.msrb.mxu2 %v4108_v8  ;;  %v5505_v59 = vld [vmem:[%s8257_s5 + $0x444] sm:$0xf]  ;;  %v4495_v8 = vld [vmem:[%s8257_s5 + $0x3c8] sm:$0xf] }
  0xee   : > { %2629 = vmatpush.bf16.msra.mxu1 %v4876_v37  ;;  %2616 = vmatpush.bf16.msra.mxu0 %v4620_v49  ;;  %v4556_v62 = vor.u32 %v5505_v59, %v4553_v60  ;;  %v4496_v15 = vor.u32 %v5494_v9, %v4495_v8  ;;  %v5462_v49 = vld [vmem:[%s8257_s5 + $0x2e4] sm:$0xf0] }
  0xef   : > { %v4368_v60 = vor.u32 %v5462_v49, %v4367_v48  ;;  %v5398_v8 = vld [vmem:[%s8257_s5 + $0xe4] sm:$0xf0] }
  0xf0   : > { %v4751_v9 = vld [vmem:[%s8257_s5 + $0x5c8] sm:$0xf] }
  0xf1   : > { %2604 = vmatpush.bf16.msrb.mxu3 %v4332_v63  ;;  %2591 = vmatpush.bf16.msrb.mxu2 %v4076_v20  ;;  %v533_v63 = vperm.slane %v6779_v61, 1  ;;  %v4911_v34 = vld [vmem:[%s8257_s5 + $0x708] sm:$0xf] }
  0xf2   : > { %2630 = vmatpush.bf16.msra.mxu1 %v4844_v46  ;;  %2617 = vmatpush.bf16.msra.mxu0 %v4588_v55  ;;  %v534_v46 = vperm.slane %v6779_v61, 2  ;;  %v4143_v55 = vld [vmem:[%s8257_s5 + $0x108] sm:$0xf]  ;;  %v5008_v61 = vor.u32 %v5622_v51, %v5007_v50  ;;  %v5482_v51 = vld [vmem:[%s8257_s5 + $0x38c] sm:$0xf] }
  0xf3   : > { %v5542_v43 = vld [vmem:[%s8257_s5 + $0x564] sm:$0xf0] }
  0xf4   : > { %v5590_v48 = vld [vmem:[%s8257_s5 + $0x6e4] sm:$0xf0] }
  0xf5   : > { %2605 = vmatpush.bf16.msrb.mxu3 %v4300_v14  ;;  %2592 = vmatpush.bf16.msrb.mxu2 %v4044_v32 }
  0xf6   : > { %2631 = vmatpush.bf16.msra.mxu1 %v4812_v52  ;;  %2618 = vmatpush.bf16.msra.mxu0 %v4556_v62  ;;  %v4335_v62 = vld [vmem:[%s8257_s5 + $0x288] sm:$0xf] }
  0xf9   : > { %2606 = vmatpush.bf16.msrb.mxu3 %v4268_v26  ;;  %2593 = vmatpush.bf16.msrb.mxu2 %v4012_v41  ;;  %v4431_v26 = vld [vmem:[%s8257_s5 + $0x348] sm:$0xf] }
  0xfa   : > { %2632 = vmatpush.bf16.msra.mxu1 %v4780_v58  ;;  %2619 = vmatpush.bf16.msra.mxu0 %v4524_v2  ;;  %v4432_v36 = vor.u32 %v5478_v27, %v4431_v26  ;;  %v4975_v2 = vld [vmem:[%s8257_s5 + $0x788] sm:$0xf] }
  0xfb   : > { %v4719_v26 = vld [vmem:[%s8257_s5 + $0x588] sm:$0xf] }
  0xfc   : > { %v5550_v27 = vld [vmem:[%s8257_s5 + $0x5a4] sm:$0xf0] }
 0x138   : > { %v895_v3 = vpop.f32.mrf.mxu0 }
 0x139   : > { %v896_v5 = vadd.f32 %v895_v3, %v533_v63  ;;  %v908_v6 = vpop.f32.mrf.mxu1  ;;  %v5614_v3 = vld [vmem:[%s8257_s5 + $0x7a4] sm:$0xf0] }
 0x13b   : > { %v909_v4 = vadd.f32 %v908_v6, %v896_v5 }
 0x13d   : > { %vm965_vm2 = vcmp.ge.f32.partialorder %v909_v4, 0.0  ;;  %v969_v10 = vmul.f32 0.01, %v909_v4 }
 0x13e   : > { %v869_v11 = vpop.f32.mrf.mxu2 }
 0x13f   : > { %v973_v12 = vsel %vm965_vm2, %v909_v4, %v969_v10  ;;  %v870_v13 = vadd.f32 %v869_v11, %v532_v7  ;;  %v882_v14 = vpop.f32.mrf.mxu3  ;;  %v4144_v4 = vor.u32 %v5406_v56, %v4143_v55  ;;  %v4111_v7 = vld [vmem:[%s8257_s5 + $0xc8] sm:$0xf] }
 0x140   : > { %v6795_v16 = vpack.c.bf16 %v973_v12, %v973_v12  ;;  %v897_v17 = vpop.f32.mrf.mxu0  ;;  %v5558_v10 = vld [vmem:[%s8257_s5 + $0x5e4] sm:$0xf0]  ;;  %v4336_v12 = vor.u32 %v5454_v1, %v4335_v62 }
 0x141   : > { %v883_v20 = vadd.f32 %v882_v14, %v870_v13  ;;  %v910_v21 = vpop.f32.mrf.mxu1  ;;  %v4976_v13 = vor.u32 %v5614_v3, %v4975_v2  ;;  %v4303_v14 = vld [vmem:[%s8257_s5 + $0x248] sm:$0xf]  ;;  %v5474_v2 = vld [vmem:[%s8257_s5 + $0x34c] sm:$0xf] }
 0x142   : > { %2555 = vmatmul.bf16.vlgmr.msra.gmra.mxu3 %v6795_v16  ;;  %v4943_v17 = vld [vmem:[%s8257_s5 + $0x748] sm:$0xf]  ;;  %v4752_v21 = vor.u32 %v5558_v10, %v4751_v9  ;;  %v4433_v3 = vld [vmem:[%s8257_s5 + $0x368] sm:$0xf0] }
 0x143   : > { %vm964_vm3 = vcmp.ge.f32.partialorder %v883_v20, 0.0  ;;  %v968_v24 = vmul.f32 0.01, %v883_v20  ;;  %2651 = vmatpush.bf16.msra.mxu3 %v4496_v15  ;;  %v5446_v15 = vld [vmem:[%s8257_s5 + $0x264] sm:$0xf0]  ;;  %v4436_v10 = vor.u32 %v5474_v2, %v4433_v3 }
 0x144   : > { %v4655_v55 = vld [vmem:[%s8257_s5 + $0x508] sm:$0xf]  ;;  %v4209_v9 = vld [vmem:[%s8257_s5 + $0x1a8] sm:$0xf0] }
 0x145   : > { %v972_v28 = vsel %vm964_vm3, %v883_v20, %v968_v24  ;;  %v4112_v20 = vor.u32 %v5398_v8, %v4111_v7  ;;  %v5534_v56 = vld [vmem:[%s8257_s5 + $0x524] sm:$0xf0]  ;;  %v5418_v8 = vld [vmem:[%s8257_s5 + $0x18c] sm:$0xf] }
 0x146   : > { %v6817_v31 = vpack.c.bf16 %v972_v28, %v972_v28  ;;  %v871_v32 = vpop.f32.mrf.mxu2  ;;  %v5582_v62 = vld [vmem:[%s8257_s5 + $0x6a4] sm:$0xf0]  ;;  %v4656_v1 = vor.u32 %v5534_v56, %v4655_v55  ;;  %v5442_v55 = vld [vmem:[%s8257_s5 + $0x24c] sm:$0xf] }
 0x147   : > { %v884_v35 = vpop.f32.mrf.mxu3  ;;  %2652 = vmatpush.bf16.msra.mxu3 %v4464_v25  ;;  %v5390_v25 = vld [vmem:[%s8257_s5 + $0xa4] sm:$0xf0]  ;;  %v4721_v2 = vld [vmem:[%s8257_s5 + $0x5a8] sm:$0xf0] }
 0x148   : > { %v947_v37 = vpop.f32.mrf.mxu0  ;;  %2542 = vmatmul.bf16.vlgmr.msra.gmra.mxu2 %v6817_v31  ;;  %v4271_v32 = vld [vmem:[%s8257_s5 + $0x208] sm:$0xf] }
 0x149   : > { %v948_v40 = vadd.f32 %v947_v37, %v535_v29  ;;  %v960_v41 = vpop.f32.mrf.mxu1  ;;  %2638 = vmatpush.bf16.msra.mxu2 %v4240_v30  ;;  %v4304_v29 = vor.u32 %v5446_v15, %v4303_v14  ;;  %v4944_v30 = vor.u32 %v5606_v18, %v4943_v17  ;;  %v5598_v35 = vld [vmem:[%s8257_s5 + $0x724] sm:$0xf0]  ;;  %v4720_v37 = vor.u32 %v5550_v27, %v4719_v26  ;;  %v5466_v14 = vld [vmem:[%s8257_s5 + $0x30c] sm:$0xf] }
 0x14a   : > { %v4272_v44 = vor.u32 %v5438_v33, %v4271_v32  ;;  %v4401_v15 = vld [vmem:[%s8257_s5 + $0x328] sm:$0xf0]  ;;  %v4212_v17 = vor.u32 %v5418_v8, %v4209_v9  ;;  %v4591_v18 = vld [vmem:[%s8257_s5 + $0x488] sm:$0xf] }
 0x14b   : > { %v961_v45 = vadd.f32 %v960_v41, %v948_v40  ;;  %2653 = vmatpush.bf16.msra.mxu3 %v4432_v36  ;;  %v4080_v36 = vor.u32 %v5390_v25, %v4079_v22  ;;  %v4047_v40 = vld [vmem:[%s8257_s5 + $0x48] sm:$0xf]  ;;  %v4177_v22 = vld [vmem:[%s8257_s5 + $0x168] sm:$0xf0] }
 0x14c   : > { %v5382_v41 = vld [vmem:[%s8257_s5 + $0x64] sm:$0xf0]  ;;  %v5458_v27 = vld [vmem:[%s8257_s5 + $0x2cc] sm:$0xf] }
 0x14d   : > { %vm967_vm4 = vcmp.ge.f32.partialorder %v961_v45, 0.0  ;;  %v971_v52 = vmul.f32 0.01, %v961_v45  ;;  %2639 = vmatpush.bf16.msra.mxu2 %v4208_v42  ;;  %v4687_v42 = vld [vmem:[%s8257_s5 + $0x548] sm:$0xf]  ;;  %v4048_v49 = vor.u32 %v5382_v41, %v4047_v40 }
 0x14e   : > { %v921_v54 = vpop.f32.mrf.mxu2  ;;  %v4688_v50 = vor.u32 %v5542_v43, %v4687_v42  ;;  %v4783_v25 = vld [vmem:[%s8257_s5 + $0x608] sm:$0xf]  ;;  %v5009_v32 = vld [vmem:[%s8257_s5 + $0x7e8] sm:$0xf0] }
 0x14f   : > { %v975_v57 = vsel %vm967_vm4, %v961_v45, %v971_v52  ;;  %v922_v58 = vadd.f32 %v921_v54, %v534_v46  ;;  %v934_v59 = vpop.f32.mrf.mxu3  ;;  %2654 = vmatpush.bf16.msra.mxu3 %v4400_v47  ;;  %v4912_v45 = vor.u32 %v5598_v35, %v4911_v34  ;;  %v4500_v46 = vor.u32 %v5490_v38, %v4497_v39  ;;  %v4879_v47 = vld [vmem:[%s8257_s5 + $0x6c8] sm:$0xf]  ;;  %v4465_v52 = vld [vmem:[%s8257_s5 + $0x3a8] sm:$0xf0] }
 0x150   : > { %v6860_v63 = vpack.c.bf16 %v975_v57, %v975_v57  ;;  %v949_v0 = vpop.f32.mrf.mxu0  ;;  %v5374_v54 = vld [vmem:[%s8257_s5 + $0x24] sm:$0xf0]  ;;  %v4880_v57 = vor.u32 %v5590_v48, %v4879_v47  ;;  %v4145_v38 = vld [vmem:[%s8257_s5 + $0x128] sm:$0xf0] }
 0x151   : > { %v935_v5 = vadd.f32 %v934_v59, %v922_v58  ;;  %v962_v6 = vpop.f32.mrf.mxu1  ;;  %2640 = vmatpush.bf16.msra.mxu2 %v4176_v53  ;;  %v4015_v53 = vld [vmem:[%s8257_s5 + $0x8] sm:$0xf]  ;;  %v5426_v58 = vld [vmem:[%s8257_s5 + $0x1cc] sm:$0xf] }
 0x152   : > { %2581 = vmatmul.bf16.vlgmr.msrb.gmra.mxu1 %v6860_v63  ;;  %2607 = vmatmul.bf16.vlgmr.msrb.gmra.mxu3 %v6795_v16  ;;  %v4241_v59 = vld [vmem:[%s8257_s5 + $0x1e8] sm:$0xf0]  ;;  %v4016_v0 = vor.u32 %v5374_v54, %v4015_v53  ;;  %v4623_v6 = vld [vmem:[%s8257_s5 + $0x4c8] sm:$0xf] }
 0x153   : > { %vm966_vm5 = vcmp.ge.f32.partialorder %v935_v5, 0.0  ;;  %v970_v11 = vmul.f32 0.01, %v935_v5  ;;  %2655 = vmatpush.bf16.msra.mxu3 %v4368_v60  ;;  %2677 = vmatpush.bf16.msrb.mxu1 %v5008_v61  ;;  %v4468_v60 = vor.u32 %v5482_v51, %v4465_v52  ;;  %v4847_v61 = vld [vmem:[%s8257_s5 + $0x688] sm:$0xf] }
 0x154   : > { %v4848_v7 = vor.u32 %v5582_v62, %v4847_v61  ;;  %v5566_v26 = vld [vmem:[%s8257_s5 + $0x624] sm:$0xf0]  ;;  %v5450_v41 = vld [vmem:[%s8257_s5 + $0x28c] sm:$0xf] }
 0x155   : > { %v974_v19 = vsel %vm966_vm5, %v935_v5, %v970_v11  ;;  %2641 = vmatpush.bf16.msra.mxu2 %v4144_v4  ;;  %v4244_v5 = vor.u32 %v5426_v58, %v4241_v59  ;;  %v5526_v4 = vld [vmem:[%s8257_s5 + $0x4e4] sm:$0xf0]  ;;  %v4337_v43 = vld [vmem:[%s8257_s5 + $0x2a8] sm:$0xf0] }
 0x156   : > { %v6900_v23 = vpack.c.bf16 %v974_v19, %v974_v19  ;;  %v923_v24 = vpop.f32.mrf.mxu2  ;;  %v4815_v11 = vld [vmem:[%s8257_s5 + $0x648] sm:$0xf]  ;;  %v5554_v51 = vld [vmem:[%s8257_s5 + $0x5cc] sm:$0xf]  ;;  %v4340_v53 = vor.u32 %v5450_v41, %v4337_v43  ;;  %v4439_v41 = vld [vmem:[%s8257_s5 + $0x350] sm:$0xf] }
 0x157   : > { %v936_v28 = vpop.f32.mrf.mxu3  ;;  %2656 = vmatpush.bf16.msra.mxu3 %v4336_v12  ;;  %2678 = vmatpush.bf16.msrb.mxu1 %v4976_v13  ;;  %v5574_v12 = vld [vmem:[%s8257_s5 + $0x664] sm:$0xf0]  ;;  %v4624_v13 = vor.u32 %v5526_v4, %v4623_v6  ;;  %v4404_v24 = vor.u32 %v5466_v14, %v4401_v15  ;;  %v4753_v52 = vld [vmem:[%s8257_s5 + $0x5e8] sm:$0xf0] }
 0x158   : > { %2568 = vmatmul.bf16.vlgmr.msrb.gmra.mxu0 %v6900_v23  ;;  %2594 = vmatmul.bf16.vlgmr.msrb.gmra.mxu2 %v6817_v31  ;;  %v5518_v19 = vld [vmem:[%s8257_s5 + $0x4a4] sm:$0xf0]  ;;  %v5602_v58 = vld [vmem:[%s8257_s5 + $0x74c] sm:$0xf]  ;;  %v4756_v61 = vor.u32 %v5554_v51, %v4753_v52 }
 0x159   : > { %2642 = vmatpush.bf16.msra.mxu2 %v4112_v20  ;;  %2664 = vmatpush.bf16.msrb.mxu0 %v4752_v21  ;;  %v4816_v20 = vor.u32 %v5574_v12, %v4815_v11  ;;  %v5410_v21 = vld [vmem:[%s8257_s5 + $0x14c] sm:$0xf]  ;;  %v4592_v28 = vor.u32 %v5518_v19, %v4591_v18  ;;  %v4559_v34 = vld [vmem:[%s8257_s5 + $0x448] sm:$0xf]  ;;  %v4503_v11 = vld [vmem:[%s8257_s5 + $0x3d0] sm:$0xf] }
 0x15a   : > { %v4180_v33 = vor.u32 %v5410_v21, %v4177_v22  ;;  %v5510_v35 = vld [vmem:[%s8257_s5 + $0x464] sm:$0xf0]  ;;  %v4945_v59 = vld [vmem:[%s8257_s5 + $0x768] sm:$0xf0]  ;;  %v5495_v12 = vld [vmem:[%s8257_s5 + $0x3ec] sm:$0xf0] }
 0x15b   : > { %2657 = vmatpush.bf16.msra.mxu3 %v4304_v29  ;;  %2679 = vmatpush.bf16.msrb.mxu1 %v4944_v30  ;;  %v4369_v29 = vld [vmem:[%s8257_s5 + $0x2e8] sm:$0xf0]  ;;  %v4560_v42 = vor.u32 %v5510_v35, %v4559_v34  ;;  %v4527_v47 = vld [vmem:[%s8257_s5 + $0x408] sm:$0xf]  ;;  %v4247_v34 = vld [vmem:[%s8257_s5 + $0x1d0] sm:$0xf] }
 0x15c   : > { %v5618_v30 = vld [vmem:[%s8257_s5 + $0x7cc] sm:$0xf]  ;;  %v4372_v39 = vor.u32 %v5458_v27, %v4369_v29  ;;  %v5502_v48 = vld [vmem:[%s8257_s5 + $0x424] sm:$0xf0]  ;;  %v5487_v27 = vld [vmem:[%s8257_s5 + $0x3ac] sm:$0xf0] }
 0x15d   : > { %2643 = vmatpush.bf16.msra.mxu2 %v4080_v36  ;;  %2665 = vmatpush.bf16.msrb.mxu0 %v4720_v37  ;;  %v4784_v36 = vor.u32 %v5566_v26, %v4783_v25  ;;  %v5402_v37 = vld [vmem:[%s8257_s5 + $0x10c] sm:$0xf]  ;;  %v5012_v40 = vor.u32 %v5618_v30, %v5009_v32  ;;  %v4528_v56 = vor.u32 %v5502_v48, %v4527_v47  ;;  %v4471_v26 = vld [vmem:[%s8257_s5 + $0x390] sm:$0xf] }
 0x15e   : > { %v5386_v62 = vld [vmem:[%s8257_s5 + $0x8c] sm:$0xf]  ;;  %v5431_v35 = vld [vmem:[%s8257_s5 + $0x1ec] sm:$0xf0] }
 0x15f   : > { %2658 = vmatpush.bf16.msra.mxu3 %v4272_v44  ;;  %2680 = vmatpush.bf16.msrb.mxu1 %v4912_v45  ;;  %v5610_v44 = vld [vmem:[%s8257_s5 + $0x78c] sm:$0xf]  ;;  %v4248_v43 = vor.u32 %v5431_v35, %v4247_v34  ;;  %v4215_v47 = vld [vmem:[%s8257_s5 + $0x190] sm:$0xf] }
 0x160   : > { %v4977_v45 = vld [vmem:[%s8257_s5 + $0x7a8] sm:$0xf0]  ;;  %v5423_v48 = vld [vmem:[%s8257_s5 + $0x1ac] sm:$0xf0] }
 0x161   : > { %2644 = vmatpush.bf16.msra.mxu2 %v4048_v49  ;;  %2666 = vmatpush.bf16.msrb.mxu0 %v4688_v50  ;;  %v5394_v49 = vld [vmem:[%s8257_s5 + $0xcc] sm:$0xf]  ;;  %v4980_v54 = vor.u32 %v5610_v44, %v4977_v45 }
 0x162   : > { %2633 = vmatmul.bf16.vlgmr.msra.gmra.mxu1 %v6860_v63  ;;  %2659 = vmatmul.bf16.vlgmr.msra.gmra.mxu3 %v6795_v16  ;;  %v4113_v50 = vld [vmem:[%s8257_s5 + $0xe8] sm:$0xf0] }
 0x163   : > { %2703 = vmatpush.bf16.msrb.mxu3 %v4500_v46  ;;  %2681 = vmatpush.bf16.msrb.mxu1 %v4880_v57  ;;  %v4148_v46 = vor.u32 %v5402_v37, %v4145_v38  ;;  %v4305_v57 = vld [vmem:[%s8257_s5 + $0x268] sm:$0xf0] }
 0x164   : > { %v4308_v3 = vor.u32 %v5442_v55, %v4305_v57  ;;  %v5434_v6 = vld [vmem:[%s8257_s5 + $0x20c] sm:$0xf]  ;;  %v4216_v55 = vor.u32 %v5423_v48, %v4215_v47  ;;  %v5599_v47 = vld [vmem:[%s8257_s5 + $0x72c] sm:$0xf0] }
 0x165   : > { %2645 = vmatpush.bf16.msra.mxu2 %v4016_v0  ;;  %2667 = vmatpush.bf16.msrb.mxu0 %v4656_v1  ;;  %v4081_v0 = vld [vmem:[%s8257_s5 + $0xa8] sm:$0xf0] }
 0x166   : > { %v5546_v1 = vld [vmem:[%s8257_s5 + $0x58c] sm:$0xf]  ;;  %v4084_v9 = vor.u32 %v5386_v62, %v4081_v0 }
 0x167   : > { %2704 = vmatpush.bf16.msrb.mxu3 %v4468_v60  ;;  %2682 = vmatpush.bf16.msrb.mxu1 %v4848_v7  ;;  %v4116_v60 = vor.u32 %v5394_v49, %v4113_v50  ;;  %v4273_v4 = vld [vmem:[%s8257_s5 + $0x228] sm:$0xf0] }
 0x168   : > { %2620 = vmatmul.bf16.vlgmr.msra.gmra.mxu0 %v6900_v23  ;;  %2646 = vmatmul.bf16.vlgmr.msra.gmra.mxu2 %v6817_v31  ;;  %v5594_v7 = vld [vmem:[%s8257_s5 + $0x70c] sm:$0xf]  ;;  %v4276_v18 = vor.u32 %v5434_v6, %v4273_v4  ;;  %v5623_v6 = vld [vmem:[%s8257_s5 + $0x7ec] sm:$0xf0] }
 0x169   : > { %2690 = vmatpush.bf16.msrb.mxu2 %v4244_v5  ;;  %2668 = vmatpush.bf16.msrb.mxu0 %v4624_v13  ;;  %v4948_v5 = vor.u32 %v5602_v58, %v4945_v59  ;;  %v4913_v8 = vld [vmem:[%s8257_s5 + $0x728] sm:$0xf0]  ;;  %v4183_v59 = vld [vmem:[%s8257_s5 + $0x150] sm:$0xf] }
 0x16a   : > { %v5378_v13 = vld [vmem:[%s8257_s5 + $0x4c] sm:$0xf]  ;;  %v4916_v19 = vor.u32 %v5594_v7, %v4913_v8 }
 0x16b   : > { %2705 = vmatpush.bf16.msrb.mxu3 %v4436_v10  ;;  %2683 = vmatpush.bf16.msrb.mxu1 %v4816_v20  ;;  %v4724_v10 = vor.u32 %v5546_v1, %v4721_v2  ;;  %v4049_v14 = vld [vmem:[%s8257_s5 + $0x68] sm:$0xf0]  ;;  %v4504_v20 = vor.u32 %v5495_v12, %v4503_v11  ;;  %v4375_v1 = vld [vmem:[%s8257_s5 + $0x2d0] sm:$0xf] }
 0x16c   : > { %v5538_v15 = vld [vmem:[%s8257_s5 + $0x54c] sm:$0xf]  ;;  %v5407_v11 = vld [vmem:[%s8257_s5 + $0x12c] sm:$0xf0] }
 0x16d   : > { %2691 = vmatpush.bf16.msrb.mxu2 %v4212_v17  ;;  %2669 = vmatpush.bf16.msrb.mxu0 %v4592_v28  ;;  %v4689_v17 = vld [vmem:[%s8257_s5 + $0x568] sm:$0xf0] }
 0x16e   : > { %v5586_v21 = vld [vmem:[%s8257_s5 + $0x6cc] sm:$0xf]  ;;  %v4692_v25 = vor.u32 %v5538_v15, %v4689_v17  ;;  %v5455_v17 = vld [vmem:[%s8257_s5 + $0x2ac] sm:$0xf0] }
 0x16f   : > { %2706 = vmatpush.bf16.msrb.mxu3 %v4404_v24  ;;  %2684 = vmatpush.bf16.msrb.mxu1 %v4784_v36  ;;  %v4881_v22 = vld [vmem:[%s8257_s5 + $0x6e8] sm:$0xf0]  ;;  %v4052_v24 = vor.u32 %v5378_v13, %v4049_v14  ;;  %v4472_v36 = vor.u32 %v5487_v27, %v4471_v26  ;;  %v4343_v14 = vld [vmem:[%s8257_s5 + $0x290] sm:$0xf] }
 0x170   : > { %v5370_v28 = vld [vmem:[%s8257_s5 + $0xc] sm:$0xf]  ;;  %v4759_v26 = vld [vmem:[%s8257_s5 + $0x5d0] sm:$0xf] }
 0x171   : > { %2692 = vmatpush.bf16.msrb.mxu2 %v4180_v33  ;;  %2670 = vmatpush.bf16.msrb.mxu0 %v4560_v42  ;;  %v4017_v29 = vld [vmem:[%s8257_s5 + $0x28] sm:$0xf0]  ;;  %v4884_v33 = vor.u32 %v5586_v21, %v4881_v22  ;;  %v5479_v42 = vld [vmem:[%s8257_s5 + $0x36c] sm:$0xf0] }
 0x172   : > { %2685 = vmatmul.bf16.vlgmr.msrb.gmra.mxu1 %v6860_v63  ;;  %v5530_v30 = vld [vmem:[%s8257_s5 + $0x50c] sm:$0xf]  ;;  %v4440_v49 = vor.u32 %v5479_v42, %v4439_v41  ;;  %v5559_v27 = vld [vmem:[%s8257_s5 + $0x5ec] sm:$0xf0] }
 0x173   : > { %2707 = vmatpush.bf16.msrb.mxu3 %v4372_v39  ;;  %2729 = vmatpush.bf16.msra.mxu1 %v5012_v40  ;;  %v4657_v32 = vld [vmem:[%s8257_s5 + $0x528] sm:$0xf0]  ;;  %v4020_v39 = vor.u32 %v5370_v28, %v4017_v29  ;;  %v4344_v28 = vor.u32 %v5455_v17, %v4343_v14  ;;  %v4760_v35 = vor.u32 %v5559_v27, %v4759_v26  ;;  %v5551_v41 = vld [vmem:[%s8257_s5 + $0x5ac] sm:$0xf0]  ;;  %v5475_v14 = vld [vmem:[%s8257_s5 + $0x354] sm:$0xf] }
 0x174   : > { %v5578_v37 = vld [vmem:[%s8257_s5 + $0x68c] sm:$0xf]  ;;  %v4660_v40 = vor.u32 %v5530_v30, %v4657_v32  ;;  %v4311_v32 = vld [vmem:[%s8257_s5 + $0x250] sm:$0xf]  ;;  %v4441_v17 = vld [vmem:[%s8257_s5 + $0x370] sm:$0xf0] }
 0x175   : > { %2693 = vmatpush.bf16.msrb.mxu2 %v4148_v46  ;;  %2671 = vmatpush.bf16.msrb.mxu0 %v4528_v56  ;;  %v4849_v38 = vld [vmem:[%s8257_s5 + $0x6a8] sm:$0xf0]  ;;  %v4823_v26 = vld [vmem:[%s8257_s5 + $0x650] sm:$0xf] }
 0x176   : > { %v5522_v44 = vld [vmem:[%s8257_s5 + $0x4cc] sm:$0xf]  ;;  %v4852_v46 = vor.u32 %v5578_v37, %v4849_v38  ;;  %v5607_v37 = vld [vmem:[%s8257_s5 + $0x76c] sm:$0xf0] }
 0x177   : > { %2708 = vmatpush.bf16.msrb.mxu3 %v4340_v53  ;;  %2730 = vmatpush.bf16.msra.mxu1 %v4980_v54  ;;  %v4625_v45 = vld [vmem:[%s8257_s5 + $0x4e8] sm:$0xf0]  ;;  %v4407_v53 = vld [vmem:[%s8257_s5 + $0x310] sm:$0xf] }
 0x178   : > { %2672 = vmatmul.bf16.vlgmr.msrb.gmra.mxu0 %v6900_v23  ;;  %v5570_v50 = vld [vmem:[%s8257_s5 + $0x64c] sm:$0xf]  ;;  %v4628_v52 = vor.u32 %v5522_v44, %v4625_v45  ;;  %v5471_v54 = vld [vmem:[%s8257_s5 + $0x32c] sm:$0xf0] }
 0x179   : > { %2694 = vmatpush.bf16.msrb.mxu2 %v4116_v60  ;;  %2716 = vmatpush.bf16.msra.mxu0 %v4756_v61  ;;  %v4817_v51 = vld [vmem:[%s8257_s5 + $0x668] sm:$0xf0]  ;;  %v5415_v60 = vld [vmem:[%s8257_s5 + $0x16c] sm:$0xf0]  ;;  %v4408_v61 = vor.u32 %v5471_v54, %v4407_v53 }
 0x17a   : > { %v5514_v56 = vld [vmem:[%s8257_s5 + $0x48c] sm:$0xf]  ;;  %v4820_v58 = vor.u32 %v5570_v50, %v4817_v51  ;;  %v4184_v4 = vor.u32 %v5415_v60, %v4183_v59  ;;  %v4087_v38 = vld [vmem:[%s8257_s5 + $0x90] sm:$0xf]  ;;  %v5491_v50 = vld [vmem:[%s8257_s5 + $0x3d4] sm:$0xf] }
 0x17b   : > { %2709 = vmatpush.bf16.msrb.mxu3 %v4308_v3  ;;  %2731 = vmatpush.bf16.msra.mxu1 %v4948_v5  ;;  %v4593_v57 = vld [vmem:[%s8257_s5 + $0x4a8] sm:$0xf0]  ;;  %v5463_v3 = vld [vmem:[%s8257_s5 + $0x2ec] sm:$0xf0]  ;;  %v4505_v51 = vld [vmem:[%s8257_s5 + $0x3f0] sm:$0xf0] }
 0x17c   : > { %v5562_v62 = vld [vmem:[%s8257_s5 + $0x60c] sm:$0xf]  ;;  %v4596_v2 = vor.u32 %v5514_v56, %v4593_v57  ;;  %v5015_v5 = vld [vmem:[%s8257_s5 + $0x7d0] sm:$0xf]  ;;  %v4376_v12 = vor.u32 %v5463_v3, %v4375_v1  ;;  %v4473_v1 = vld [vmem:[%s8257_s5 + $0x3b0] sm:$0xf0] }
 0x17d   : > { %2695 = vmatpush.bf16.msrb.mxu2 %v4084_v9  ;;  %2717 = vmatpush.bf16.msra.mxu0 %v4724_v10  ;;  %v4785_v0 = vld [vmem:[%s8257_s5 + $0x628] sm:$0xf0]  ;;  %v4151_v10 = vld [vmem:[%s8257_s5 + $0x110] sm:$0xf]  ;;  %v5016_v13 = vor.u32 %v5623_v6, %v5015_v5 }
 0x17e   : > { %v5506_v7 = vld [vmem:[%s8257_s5 + $0x44c] sm:$0xf]  ;;  %v4788_v9 = vor.u32 %v5562_v62, %v4785_v0  ;;  %v5439_v45 = vld [vmem:[%s8257_s5 + $0x22c] sm:$0xf0]  ;;  %v5483_v0 = vld [vmem:[%s8257_s5 + $0x394] sm:$0xf] }
 0x17f   : > { %2710 = vmatpush.bf16.msrb.mxu3 %v4276_v18  ;;  %2732 = vmatpush.bf16.msra.mxu1 %v4916_v19  ;;  %v4561_v8 = vld [vmem:[%s8257_s5 + $0x468] sm:$0xf0]  ;;  %v4983_v18 = vld [vmem:[%s8257_s5 + $0x790] sm:$0xf] }
 0x180   : > { %v4564_v15 = vor.u32 %v5506_v7, %v4561_v8  ;;  %v5615_v19 = vld [vmem:[%s8257_s5 + $0x7ac] sm:$0xf0]  ;;  %v5498_v21 = vld [vmem:[%s8257_s5 + $0x40c] sm:$0xf]  ;;  %v4249_v7 = vld [vmem:[%s8257_s5 + $0x1f0] sm:$0xf0] }
 0x181   : > { %2696 = vmatpush.bf16.msrb.mxu2 %v4052_v24  ;;  %2718 = vmatpush.bf16.msra.mxu0 %v4692_v25  ;;  %v4529_v22 = vld [vmem:[%s8257_s5 + $0x428] sm:$0xf0]  ;;  %v4119_v24 = vld [vmem:[%s8257_s5 + $0xd0] sm:$0xf]  ;;  %v4984_v29 = vor.u32 %v5615_v19, %v4983_v18 }
 0x182   : > { %2711 = vmatmul.bf16.vlgmr.msrb.gmra.mxu3 %v6795_v16  ;;  %v5399_v25 = vld [vmem:[%s8257_s5 + $0xec] sm:$0xf0]  ;;  %v4532_v30 = vor.u32 %v5498_v21, %v4529_v22  ;;  %v4217_v21 = vld [vmem:[%s8257_s5 + $0x1b0] sm:$0xf0] }
 0x183   : > { %2755 = vmatpush.bf16.msra.mxu3 %v4504_v20  ;;  %2733 = vmatpush.bf16.msra.mxu1 %v4884_v33  ;;  %v4152_v20 = vor.u32 %v5407_v11, %v4151_v10  ;;  %v5447_v33 = vld [vmem:[%s8257_s5 + $0x26c] sm:$0xf0]  ;;  %v4120_v34 = vor.u32 %v5399_v25, %v4119_v24  ;;  %v4444_v24 = vor.u32 %v5475_v14, %v4441_v17  ;;  %v4729_v14 = vld [vmem:[%s8257_s5 + $0x5b0] sm:$0xf0] }
 0x184   : > { %v4312_v42 = vor.u32 %v5447_v33, %v4311_v32  ;;  %v5383_v53 = vld [vmem:[%s8257_s5 + $0x6c] sm:$0xf0]  ;;  %v5435_v17 = vld [vmem:[%s8257_s5 + $0x214] sm:$0xf] }
 0x185   : > { %2697 = vmatpush.bf16.msrb.mxu2 %v4020_v39  ;;  %2719 = vmatpush.bf16.msra.mxu0 %v4660_v40  ;;  %v5391_v39 = vld [vmem:[%s8257_s5 + $0xac] sm:$0xf0] }
 0x186   : > { %v4727_v40 = vld [vmem:[%s8257_s5 + $0x590] sm:$0xf]  ;;  %v4088_v48 = vor.u32 %v5391_v39, %v4087_v38 }
 0x187   : > { %2756 = vmatpush.bf16.msra.mxu3 %v4472_v36  ;;  %2734 = vmatpush.bf16.msra.mxu1 %v4852_v46  ;;  %v4951_v36 = vld [vmem:[%s8257_s5 + $0x750] sm:$0xf] }
 0x188   : > { %2698 = vmatmul.bf16.vlgmr.msrb.gmra.mxu2 %v6817_v31  ;;  %v4952_v44 = vor.u32 %v5607_v37, %v4951_v36  ;;  %v4919_v46 = vld [vmem:[%s8257_s5 + $0x710] sm:$0xf] }
 0x189   : > { %2742 = vmatpush.bf16.msra.mxu2 %v4248_v43  ;;  %2720 = vmatpush.bf16.msra.mxu0 %v4628_v52  ;;  %v4279_v43 = vld [vmem:[%s8257_s5 + $0x210] sm:$0xf]  ;;  %v4920_v57 = vor.u32 %v5599_v47, %v4919_v46 }
 0x18a   : > { %v4055_v52 = vld [vmem:[%s8257_s5 + $0x50] sm:$0xf]  ;;  %v4280_v56 = vor.u32 %v5439_v45, %v4279_v43  ;;  %v5017_v45 = vld [vmem:[%s8257_s5 + $0x7f0] sm:$0xf0] }
 0x18b   : > { %2757 = vmatpush.bf16.msra.mxu3 %v4440_v49  ;;  %2735 = vmatpush.bf16.msra.mxu1 %v4820_v58  ;;  %v4728_v49 = vor.u32 %v5551_v41, %v4727_v40  ;;  %v4695_v54 = vld [vmem:[%s8257_s5 + $0x550] sm:$0xf]  ;;  %v4508_v58 = vor.u32 %v5491_v50, %v4505_v51  ;;  %v5459_v41 = vld [vmem:[%s8257_s5 + $0x2d4] sm:$0xf] }
 0x18c   : > { %v4887_v59 = vld [vmem:[%s8257_s5 + $0x6d0] sm:$0xf] }
 0x18d   : > { %2743 = vmatpush.bf16.msra.mxu2 %v4216_v55  ;;  %2721 = vmatpush.bf16.msra.mxu0 %v4596_v2  ;;  %v5543_v55 = vld [vmem:[%s8257_s5 + $0x56c] sm:$0xf0] }
 0x18e   : > { %v5591_v60 = vld [vmem:[%s8257_s5 + $0x6ec] sm:$0xf0]  ;;  %v4696_v62 = vor.u32 %v5543_v55, %v4695_v54  ;;  %v4345_v54 = vld [vmem:[%s8257_s5 + $0x2b0] sm:$0xf0] }
 0x18f   : > { %2758 = vmatpush.bf16.msra.mxu3 %v4408_v61  ;;  %2736 = vmatpush.bf16.msra.mxu1 %v4788_v9  ;;  %v4056_v61 = vor.u32 %v5383_v53, %v4055_v52  ;;  %v4023_v2 = vld [vmem:[%s8257_s5 + $0x10] sm:$0xf]  ;;  %v4888_v8 = vor.u32 %v5591_v60, %v4887_v59  ;;  %v4476_v9 = vor.u32 %v5483_v0, %v4473_v1  ;;  %v5451_v53 = vld [vmem:[%s8257_s5 + $0x294] sm:$0xf] }
 0x190   : > { %v5375_v3 = vld [vmem:[%s8257_s5 + $0x2c] sm:$0xf0]  ;;  %v5555_v0 = vld [vmem:[%s8257_s5 + $0x5d4] sm:$0xf] }
 0x191   : > { %2744 = vmatpush.bf16.msra.mxu2 %v4184_v4  ;;  %2722 = vmatpush.bf16.msra.mxu0 %v4564_v15  ;;  %v4663_v5 = vld [vmem:[%s8257_s5 + $0x510] sm:$0xf]  ;;  %v5427_v4 = vld [vmem:[%s8257_s5 + $0x1d4] sm:$0xf]  ;;  %v4024_v10 = vor.u32 %v5375_v3, %v4023_v2  ;;  %v4348_v2 = vor.u32 %v5451_v53, %v4345_v54  ;;  %v4447_v53 = vld [vmem:[%s8257_s5 + $0x358] sm:$0xf] }
 0x192   : > { %2737 = vmatmul.bf16.vlgmr.msra.gmra.mxu1 %v6860_v63  ;;  %v5535_v6 = vld [vmem:[%s8257_s5 + $0x52c] sm:$0xf0]  ;;  %v4252_v15 = vor.u32 %v5427_v4, %v4249_v7  ;;  %v4761_v1 = vld [vmem:[%s8257_s5 + $0x5f0] sm:$0xf0] }
 0x193   : > { %2759 = vmatpush.bf16.msra.mxu3 %v4376_v12  ;;  %2781 = vmatpush.bf16.msrb.mxu1 %v5016_v13  ;;  %v4664_v11 = vor.u32 %v5535_v6, %v4663_v5  ;;  %v4855_v12 = vld [vmem:[%s8257_s5 + $0x690] sm:$0xf]  ;;  %v5443_v4 = vld [vmem:[%s8257_s5 + $0x254] sm:$0xf] }
 0x194   : > { %v5583_v13 = vld [vmem:[%s8257_s5 + $0x6ac] sm:$0xf0]  ;;  %v4313_v7 = vld [vmem:[%s8257_s5 + $0x270] sm:$0xf0] }
 0x195   : > { %2745 = vmatpush.bf16.msra.mxu2 %v4152_v20  ;;  %2723 = vmatpush.bf16.msra.mxu0 %v4532_v30  ;;  %v4631_v18 = vld [vmem:[%s8257_s5 + $0x4d0] sm:$0xf]  ;;  %v5419_v20 = vld [vmem:[%s8257_s5 + $0x194] sm:$0xf]  ;;  %v4856_v22 = vor.u32 %v5583_v13, %v4855_v12 }
 0x196   : > { %v5527_v19 = vld [vmem:[%s8257_s5 + $0x4ec] sm:$0xf0]  ;;  %v4409_v30 = vld [vmem:[%s8257_s5 + $0x330] sm:$0xf0] }
 0x197   : > { %2760 = vmatpush.bf16.msra.mxu3 %v4344_v28  ;;  %2782 = vmatpush.bf16.msrb.mxu1 %v4984_v29  ;;  %v4632_v25 = vor.u32 %v5527_v19, %v4631_v18  ;;  %v5575_v27 = vld [vmem:[%s8257_s5 + $0x66c] sm:$0xf0]  ;;  %v5467_v28 = vld [vmem:[%s8257_s5 + $0x314] sm:$0xf]  ;;  %v4220_v29 = vor.u32 %v5419_v20, %v4217_v21 }
 0x198   : > { %2724 = vmatmul.bf16.vlgmr.msra.gmra.mxu0 %v6900_v23  ;;  %v4599_v32 = vld [vmem:[%s8257_s5 + $0x490] sm:$0xf]  ;;  %v4824_v36 = vor.u32 %v5575_v27, %v4823_v26  ;;  %v4412_v38 = vor.u32 %v5467_v28, %v4409_v30  ;;  %v4089_v12 = vld [vmem:[%s8257_s5 + $0xb0] sm:$0xf0]  ;;  %v5496_v26 = vld [vmem:[%s8257_s5 + $0x3f4] sm:$0xf0] }
 0x199   : > { %2746 = vmatpush.bf16.msra.mxu2 %v4120_v34  ;;  %2768 = vmatpush.bf16.msrb.mxu0 %v4760_v35  ;;  %v5519_v33 = vld [vmem:[%s8257_s5 + $0x4ac] sm:$0xf0]  ;;  %v5411_v34 = vld [vmem:[%s8257_s5 + $0x154] sm:$0xf] }
 0x19a   : > { %v4185_v35 = vld [vmem:[%s8257_s5 + $0x170] sm:$0xf0]  ;;  %v4791_v37 = vld [vmem:[%s8257_s5 + $0x610] sm:$0xf]  ;;  %v4600_v39 = vor.u32 %v5519_v33, %v4599_v32 }
 0x19b   : > { %2761 = vmatpush.bf16.msra.mxu3 %v4312_v42  ;;  %2783 = vmatpush.bf16.msrb.mxu1 %v4952_v44  ;;  %v5567_v40 = vld [vmem:[%s8257_s5 + $0x62c] sm:$0xf0]  ;;  %v4377_v42 = vld [vmem:[%s8257_s5 + $0x2f0] sm:$0xf0]  ;;  %v4188_v43 = vor.u32 %v5411_v34, %v4185_v35 }
 0x19c   : > { %v5619_v44 = vld [vmem:[%s8257_s5 + $0x7d4] sm:$0xf]  ;;  %v4567_v46 = vld [vmem:[%s8257_s5 + $0x450] sm:$0xf]  ;;  %v4792_v50 = vor.u32 %v5567_v40, %v4791_v37  ;;  %v4380_v51 = vor.u32 %v5459_v41, %v4377_v42  ;;  %v5488_v40 = vld [vmem:[%s8257_s5 + $0x3b4] sm:$0xf0] }
 0x19d   : > { %2747 = vmatpush.bf16.msra.mxu2 %v4088_v48  ;;  %2769 = vmatpush.bf16.msrb.mxu0 %v4728_v49  ;;  %v5511_v47 = vld [vmem:[%s8257_s5 + $0x46c] sm:$0xf0]  ;;  %v5403_v48 = vld [vmem:[%s8257_s5 + $0x114] sm:$0xf]  ;;  %v5020_v52 = vor.u32 %v5619_v44, %v5017_v45  ;;  %v4255_v45 = vld [vmem:[%s8257_s5 + $0x1d8] sm:$0xf] }
 0x19e   : > { %v4153_v49 = vld [vmem:[%s8257_s5 + $0x130] sm:$0xf0]  ;;  %v4568_v55 = vor.u32 %v5511_v47, %v4567_v46  ;;  %v4535_v59 = vld [vmem:[%s8257_s5 + $0x410] sm:$0xf]  ;;  %v5432_v46 = vld [vmem:[%s8257_s5 + $0x1f4] sm:$0xf0] }
 0x19f   : > { %2762 = vmatpush.bf16.msra.mxu3 %v4280_v56  ;;  %2784 = vmatpush.bf16.msrb.mxu1 %v4920_v57  ;;  %v4156_v56 = vor.u32 %v5403_v48, %v4153_v49  ;;  %v5611_v57 = vld [vmem:[%s8257_s5 + $0x794] sm:$0xf]  ;;  %v5503_v60 = vld [vmem:[%s8257_s5 + $0x42c] sm:$0xf0]  ;;  %v4256_v54 = vor.u32 %v5432_v46, %v4255_v45 }
 0x1a0   : > { %v4536_v5 = vor.u32 %v5503_v60, %v4535_v59  ;;  %v5547_v13 = vld [vmem:[%s8257_s5 + $0x594] sm:$0xf]  ;;  %v5424_v59 = vld [vmem:[%s8257_s5 + $0x1b4] sm:$0xf0] }
 0x1a1   : > { %2748 = vmatpush.bf16.msra.mxu2 %v4056_v61  ;;  %2770 = vmatpush.bf16.msrb.mxu0 %v4696_v62  ;;  %v5395_v61 = vld [vmem:[%s8257_s5 + $0xd4] sm:$0xf] }
 0x1a2   : > { %2763 = vmatmul.bf16.vlgmr.msra.gmra.mxu3 %v6795_v16  ;;  %v4121_v62 = vld [vmem:[%s8257_s5 + $0xf0] sm:$0xf0] }
 0x1a3   : > { %2807 = vmatpush.bf16.msrb.mxu3 %v4508_v58  ;;  %2785 = vmatpush.bf16.msrb.mxu1 %v4888_v8  ;;  %v4985_v58 = vld [vmem:[%s8257_s5 + $0x7b0] sm:$0xf0]  ;;  %v4124_v6 = vor.u32 %v5395_v61, %v4121_v62 }
 0x1a4   : > { %v4988_v3 = vor.u32 %v5611_v57, %v4985_v58  ;;  %v5603_v8 = vld [vmem:[%s8257_s5 + $0x754] sm:$0xf]  ;;  %v4223_v58 = vld [vmem:[%s8257_s5 + $0x198] sm:$0xf] }
 0x1a5   : > { %2749 = vmatpush.bf16.msra.mxu2 %v4024_v10  ;;  %2771 = vmatpush.bf16.msrb.mxu0 %v4664_v11  ;;  %v4953_v10 = vld [vmem:[%s8257_s5 + $0x770] sm:$0xf0] }
 0x1a6   : > { %v5387_v11 = vld [vmem:[%s8257_s5 + $0x94] sm:$0xf]  ;;  %v4956_v18 = vor.u32 %v5603_v8, %v4953_v10  ;;  %v5416_v8 = vld [vmem:[%s8257_s5 + $0x174] sm:$0xf0] }
 0x1a7   : > { %2808 = vmatpush.bf16.msrb.mxu3 %v4476_v9  ;;  %2786 = vmatpush.bf16.msrb.mxu1 %v4856_v22  ;;  %v4764_v9 = vor.u32 %v5555_v0, %v4761_v1  ;;  %v4092_v19 = vor.u32 %v5387_v11, %v4089_v12  ;;  %v4281_v20 = vld [vmem:[%s8257_s5 + $0x230] sm:$0xf0] }
 0x1a8   : > { %2750 = vmatmul.bf16.vlgmr.msra.gmra.mxu2 %v6817_v31  ;;  %v5595_v21 = vld [vmem:[%s8257_s5 + $0x714] sm:$0xf]  ;;  %v4284_v32 = vor.u32 %v5435_v17, %v4281_v20 }
 0x1a9   : > { %2794 = vmatpush.bf16.msrb.mxu2 %v4252_v15  ;;  %2772 = vmatpush.bf16.msrb.mxu0 %v4632_v25  ;;  %v4316_v15 = vor.u32 %v5443_v4, %v4313_v7  ;;  %v4921_v22 = vld [vmem:[%s8257_s5 + $0x730] sm:$0xf0]  ;;  %v4511_v25 = vld [vmem:[%s8257_s5 + $0x3d8] sm:$0xf] }
 0x1aa   : > { %v5379_v27 = vld [vmem:[%s8257_s5 + $0x54] sm:$0xf]  ;;  %v4924_v33 = vor.u32 %v5595_v21, %v4921_v22  ;;  %v4512_v34 = vor.u32 %v5496_v26, %v4511_v25  ;;  %v4191_v7 = vld [vmem:[%s8257_s5 + $0x158] sm:$0xf] }
 0x1ab   : > { %2809 = vmatpush.bf16.msrb.mxu3 %v4444_v24  ;;  %2787 = vmatpush.bf16.msrb.mxu1 %v4824_v36  ;;  %v4732_v24 = vor.u32 %v5547_v13, %v4729_v14  ;;  %v4057_v28 = vld [vmem:[%s8257_s5 + $0x70] sm:$0xf0]  ;;  %v4383_v14 = vld [vmem:[%s8257_s5 + $0x2d8] sm:$0xf]  ;;  %v4192_v17 = vor.u32 %v5416_v8, %v4191_v7  ;;  %v5492_v7 = vld [vmem:[%s8257_s5 + $0x3dc] sm:$0xf] }
 0x1ac   : > { %v4697_v30 = vld [vmem:[%s8257_s5 + $0x570] sm:$0xf0]  ;;  %v4060_v37 = vor.u32 %v5379_v27, %v4057_v28  ;;  %v4159_v22 = vld [vmem:[%s8257_s5 + $0x118] sm:$0xf]  ;;  %v4513_v8 = vld [vmem:[%s8257_s5 + $0x3f8] sm:$0xf0] }
 0x1ad   : > { %2795 = vmatpush.bf16.msrb.mxu2 %v4220_v29  ;;  %2773 = vmatpush.bf16.msrb.mxu0 %v4600_v39  ;;  %v5539_v29 = vld [vmem:[%s8257_s5 + $0x554] sm:$0xf]  ;;  %v4479_v39 = vld [vmem:[%s8257_s5 + $0x398] sm:$0xf] }
 0x1ae   : > { %v5587_v35 = vld [vmem:[%s8257_s5 + $0x6d4] sm:$0xf]  ;;  %v4480_v48 = vor.u32 %v5488_v40, %v4479_v39  ;;  %v4127_v39 = vld [vmem:[%s8257_s5 + $0xd8] sm:$0xf] }
 0x1af   : > { %2810 = vmatpush.bf16.msrb.mxu3 %v4412_v38  ;;  %2788 = vmatpush.bf16.msrb.mxu1 %v4792_v50  ;;  %v4889_v36 = vld [vmem:[%s8257_s5 + $0x6f0] sm:$0xf0]  ;;  %v4700_v38 = vor.u32 %v5539_v29, %v4697_v30  ;;  %v4351_v29 = vld [vmem:[%s8257_s5 + $0x298] sm:$0xf] }
 0x1b0   : > { %v5371_v41 = vld [vmem:[%s8257_s5 + $0x14] sm:$0xf]  ;;  %v4892_v47 = vor.u32 %v5587_v35, %v4889_v36  ;;  %v5456_v30 = vld [vmem:[%s8257_s5 + $0x2b4] sm:$0xf0] }
 0x1b1   : > { %2796 = vmatpush.bf16.msrb.mxu2 %v4188_v43  ;;  %2774 = vmatpush.bf16.msrb.mxu0 %v4568_v55  ;;  %v4025_v42 = vld [vmem:[%s8257_s5 + $0x30] sm:$0xf0]  ;;  %v5480_v55 = vld [vmem:[%s8257_s5 + $0x374] sm:$0xf0] }
 0x1b2   : > { %2789 = vmatmul.bf16.vlgmr.msrb.gmra.mxu1 %v6860_v63  ;;  %v5531_v43 = vld [vmem:[%s8257_s5 + $0x514] sm:$0xf]  ;;  %v4028_v49 = vor.u32 %v5371_v41, %v4025_v42  ;;  %v4448_v61 = vor.u32 %v5480_v55, %v4447_v53  ;;  %v4991_v35 = vld [vmem:[%s8257_s5 + $0x798] sm:$0xf] }
 0x1b3   : > { %2811 = vmatpush.bf16.msrb.mxu3 %v4380_v51  ;;  %2833 = vmatpush.bf16.msra.mxu1 %v5020_v52  ;;  %v4665_v44 = vld [vmem:[%s8257_s5 + $0x530] sm:$0xf0]  ;;  %v5616_v36 = vld [vmem:[%s8257_s5 + $0x7b4] sm:$0xf0] }
 0x1b4   : > { %v4668_v50 = vor.u32 %v5531_v43, %v4665_v44  ;;  %v5579_v51 = vld [vmem:[%s8257_s5 + $0x694] sm:$0xf]  ;;  %v5400_v40 = vld [vmem:[%s8257_s5 + $0xf4] sm:$0xf0]  ;;  %v4352_v44 = vor.u32 %v5456_v30, %v4351_v29  ;;  %v4992_v45 = vor.u32 %v5616_v36, %v4991_v35 }
 0x1b5   : > { %2797 = vmatpush.bf16.msrb.mxu2 %v4156_v56  ;;  %2775 = vmatpush.bf16.msrb.mxu0 %v4536_v5  ;;  %v4857_v52 = vld [vmem:[%s8257_s5 + $0x6b0] sm:$0xf0]  ;;  %v5472_v5 = vld [vmem:[%s8257_s5 + $0x334] sm:$0xf0] }
 0x1b6   : > { %v5523_v56 = vld [vmem:[%s8257_s5 + $0x4d4] sm:$0xf]  ;;  %v4860_v60 = vor.u32 %v5579_v51, %v4857_v52  ;;  %v4767_v42 = vld [vmem:[%s8257_s5 + $0x5d8] sm:$0xf] }
 0x1b7   : > { %2812 = vmatpush.bf16.msrb.mxu3 %v4348_v2  ;;  %2834 = vmatpush.bf16.msra.mxu1 %v4988_v3  ;;  %v4633_v57 = vld [vmem:[%s8257_s5 + $0x4f0] sm:$0xf0]  ;;  %v4415_v2 = vld [vmem:[%s8257_s5 + $0x318] sm:$0xf]  ;;  %v4224_v3 = vor.u32 %v5424_v59, %v4223_v58 }
 0x1b8   : > { %2776 = vmatmul.bf16.vlgmr.msrb.gmra.mxu0 %v6900_v23  ;;  %v4636_v62 = vor.u32 %v5523_v56, %v4633_v57  ;;  %v5571_v0 = vld [vmem:[%s8257_s5 + $0x654] sm:$0xf]  ;;  %v4416_v11 = vor.u32 %v5472_v5, %v4415_v2  ;;  %v5560_v43 = vld [vmem:[%s8257_s5 + $0x5f4] sm:$0xf0] }
 0x1b9   : > { %2798 = vmatpush.bf16.msrb.mxu2 %v4124_v6  ;;  %2820 = vmatpush.bf16.msra.mxu0 %v4764_v9  ;;  %v4825_v1 = vld [vmem:[%s8257_s5 + $0x670] sm:$0xf0]  ;;  %v4768_v52 = vor.u32 %v5560_v43, %v4767_v42  ;;  %v5608_v53 = vld [vmem:[%s8257_s5 + $0x774] sm:$0xf0]  ;;  %v5476_v43 = vld [vmem:[%s8257_s5 + $0x35c] sm:$0xf] }
 0x1ba   : > { %v5515_v6 = vld [vmem:[%s8257_s5 + $0x494] sm:$0xf]  ;;  %v4828_v9 = vor.u32 %v5571_v0, %v4825_v1  ;;  %v5392_v55 = vld [vmem:[%s8257_s5 + $0xb4] sm:$0xf0] }
 0x1bb   : > { %2813 = vmatpush.bf16.msrb.mxu3 %v4316_v15  ;;  %2835 = vmatpush.bf16.msra.mxu1 %v4956_v18  ;;  %v4601_v4 = vld [vmem:[%s8257_s5 + $0x4b0] sm:$0xf0]  ;;  %v5464_v15 = vld [vmem:[%s8257_s5 + $0x2f4] sm:$0xf0] }
 0x1bc   : > { %v5563_v10 = vld [vmem:[%s8257_s5 + $0x614] sm:$0xf]  ;;  %v4604_v12 = vor.u32 %v5515_v6, %v4601_v4  ;;  %v5023_v18 = vld [vmem:[%s8257_s5 + $0x7d8] sm:$0xf]  ;;  %v4384_v27 = vor.u32 %v5464_v15, %v4383_v14  ;;  %v4516_v15 = vor.u32 %v5492_v7, %v4513_v8 }
 0x1bd   : > { %2799 = vmatpush.bf16.msrb.mxu2 %v4092_v19  ;;  %2821 = vmatpush.bf16.msra.mxu0 %v4732_v24  ;;  %v4793_v13 = vld [vmem:[%s8257_s5 + $0x630] sm:$0xf0]  ;;  %v5624_v19 = vld [vmem:[%s8257_s5 + $0x7f4] sm:$0xf0] }
 0x1be   : > { %v5507_v20 = vld [vmem:[%s8257_s5 + $0x454] sm:$0xf]  ;;  %v5408_v24 = vld [vmem:[%s8257_s5 + $0x134] sm:$0xf0]  ;;  %v4796_v25 = vor.u32 %v5563_v10, %v4793_v13  ;;  %v5024_v28 = vor.u32 %v5624_v19, %v5023_v18 }
 0x1bf   : > { %2814 = vmatpush.bf16.msrb.mxu3 %v4284_v32  ;;  %2836 = vmatpush.bf16.msra.mxu1 %v4924_v33  ;;  %v4569_v21 = vld [vmem:[%s8257_s5 + $0x470] sm:$0xf0]  ;;  %v7652_v32 = vld [vmem:[%s8258_s6] sm:$0xff]  ;;  %v4735_v57 = vld [vmem:[%s8257_s5 + $0x598] sm:$0xf] }
 0x1c0   : > { %v4572_v33 = vor.u32 %v5507_v20, %v4569_v21  ;;  %v1238_v41 = vperm.slane %v7652_v32, 0  ;;  %v5552_v58 = vld [vmem:[%s8257_s5 + $0x5b4] sm:$0xf0] }
 0x1c1   : > { %2800 = vmatpush.bf16.msrb.mxu2 %v4060_v37  ;;  %2822 = vmatpush.bf16.msra.mxu0 %v4700_v38  ;;  %v5499_v37 = vld [vmem:[%s8257_s5 + $0x414] sm:$0xf]  ;;  %v5440_v1 = vld [vmem:[%s8257_s5 + $0x234] sm:$0xf0]  ;;  %v4736_v4 = vor.u32 %v5552_v58, %v4735_v57  ;;  %v5468_v57 = vld [vmem:[%s8257_s5 + $0x31c] sm:$0xf] }
 0x1c2   : > { %2815 = vmatmul.bf16.vlgmr.msrb.gmra.mxu3 %v6795_v16  ;;  %v4537_v38 = vld [vmem:[%s8257_s5 + $0x430] sm:$0xf0]  ;;  %v4927_v2 = vld [vmem:[%s8257_s5 + $0x718] sm:$0xf] }
 0x1c3   : > { %2859 = vmatpush.bf16.msra.mxu3 %v4512_v34  ;;  %2837 = vmatpush.bf16.msra.mxu1 %v4892_v47  ;;  %v4160_v34 = vor.u32 %v5408_v24, %v4159_v22  ;;  %v4540_v46 = vor.u32 %v5499_v37, %v4537_v38  ;;  %v4128_v47 = vor.u32 %v5400_v40, %v4127_v39  ;;  %v5384_v10 = vld [vmem:[%s8257_s5 + $0x74] sm:$0xf0]  ;;  %v5484_v22 = vld [vmem:[%s8257_s5 + $0x39c] sm:$0xf] }
 0x1c4   : > { %v5592_v18 = vld [vmem:[%s8257_s5 + $0x6f4] sm:$0xf0]  ;;  %v4481_v24 = vld [vmem:[%s8257_s5 + $0x3b8] sm:$0xf0] }
 0x1c5   : > { %2801 = vmatpush.bf16.msrb.mxu2 %v4028_v49  ;;  %2823 = vmatpush.bf16.msra.mxu0 %v4668_v50  ;;  %v2556_v26 = vpop.f32.mrf.mxu3  ;;  %v5448_v49 = vld [vmem:[%s8257_s5 + $0x274] sm:$0xf0]  ;;  %v4484_v37 = vor.u32 %v5484_v22, %v4481_v24  ;;  %v5452_v24 = vld [vmem:[%s8257_s5 + $0x29c] sm:$0xf] }
 0x1c6   : > { %v4959_v50 = vld [vmem:[%s8257_s5 + $0x758] sm:$0xf] }
 0x1c7   : > { %2860 = vmatpush.bf16.msra.mxu3 %v4480_v48  ;;  %2838 = vmatpush.bf16.msra.mxu1 %v4860_v60  ;;  %v4319_v48 = vld [vmem:[%s8257_s5 + $0x258] sm:$0xf] }
 0x1c8   : > { %2802 = vmatmul.bf16.vlgmr.msrb.gmra.mxu2 %v6817_v31  ;;  %v4320_v60 = vor.u32 %v5448_v49, %v4319_v48  ;;  %v5584_v42 = vld [vmem:[%s8257_s5 + $0x6b4] sm:$0xf0]  ;;  %v5420_v49 = vld [vmem:[%s8257_s5 + $0x19c] sm:$0xf] }
 0x1c9   : > { %2846 = vmatpush.bf16.msra.mxu2 %v4256_v54  ;;  %2824 = vmatpush.bf16.msra.mxu0 %v4636_v62  ;;  %v4095_v54 = vld [vmem:[%s8257_s5 + $0x98] sm:$0xf]  ;;  %v4960_v62 = vor.u32 %v5608_v53, %v4959_v50  ;;  %v4225_v50 = vld [vmem:[%s8257_s5 + $0x1b8] sm:$0xf0] }
 0x1ca   : > { %v4096_v0 = vor.u32 %v5392_v55, %v4095_v54  ;;  %v5528_v48 = vld [vmem:[%s8257_s5 + $0x4f4] sm:$0xf0]  ;;  %v4228_v58 = vor.u32 %v5420_v49, %v4225_v50  ;;  %v5604_v49 = vld [vmem:[%s8257_s5 + $0x75c] sm:$0xf] }
 0x1cb   : > { %2861 = vmatpush.bf16.msra.mxu3 %v4448_v61  ;;  %2839 = vmatpush.bf16.msra.mxu1 %v4828_v9  ;;  %v2543_v51 = vpop.f32.mrf.mxu2  ;;  %v4287_v61 = vld [vmem:[%s8257_s5 + $0x218] sm:$0xf] }
 0x1cc   : > { %v2544_v56 = vadd.f32 %v2543_v51, %v1238_v41  ;;  %v4063_v9 = vld [vmem:[%s8257_s5 + $0x58] sm:$0xf]  ;;  %v4288_v13 = vor.u32 %v5440_v1, %v4287_v61  ;;  %v5412_v1 = vld [vmem:[%s8257_s5 + $0x15c] sm:$0xf] }
 0x1cd   : > { %2847 = vmatpush.bf16.msra.mxu2 %v4224_v3  ;;  %2825 = vmatpush.bf16.msra.mxu0 %v4604_v12  ;;  %v2558_v59 = vpop.f32.mrf.mxu3  ;;  %v5600_v3 = vld [vmem:[%s8257_s5 + $0x734] sm:$0xf0]  ;;  %v4064_v20 = vor.u32 %v5384_v10, %v4063_v9  ;;  %v5460_v9 = vld [vmem:[%s8257_s5 + $0x2dc] sm:$0xf] }
 0x1ce   : > { %v2557_v5 = vadd.f32 %v2556_v26, %v2544_v56  ;;  %v5544_v12 = vld [vmem:[%s8257_s5 + $0x574] sm:$0xf0]  ;;  %v4928_v14 = vor.u32 %v5600_v3, %v4927_v2  ;;  %v4417_v59 = vld [vmem:[%s8257_s5 + $0x338] sm:$0xf0] }
 0x1cf   : > { %2862 = vmatpush.bf16.msra.mxu3 %v4416_v11  ;;  %2840 = vmatpush.bf16.msra.mxu1 %v4796_v25  ;;  %v2582_v6 = vpop.f32.mrf.mxu1  ;;  %v4703_v11 = vld [vmem:[%s8257_s5 + $0x558] sm:$0xf]  ;;  %v4193_v2 = vld [vmem:[%s8257_s5 + $0x178] sm:$0xf0] }
 0x1d0   : > { %v4704_v21 = vor.u32 %v5544_v12, %v4703_v11  ;;  %v4031_v25 = vld [vmem:[%s8257_s5 + $0x18] sm:$0xf]  ;;  %v4385_v10 = vld [vmem:[%s8257_s5 + $0x2f8] sm:$0xf0]  ;;  %v4196_v11 = vor.u32 %v5412_v1, %v4193_v2 }
 0x1d1   : > { %2848 = vmatpush.bf16.msra.mxu2 %v4192_v17  ;;  %2826 = vmatpush.bf16.msra.mxu0 %v4572_v33  ;;  %v4895_v17 = vld [vmem:[%s8257_s5 + $0x6d8] sm:$0xf]  ;;  %v5428_v33 = vld [vmem:[%s8257_s5 + $0x1dc] sm:$0xf] }
 0x1d2   : > { %2841 = vmatmul.bf16.vlgmr.msra.gmra.mxu1 %v6860_v63  ;;  %v5376_v26 = vld [vmem:[%s8257_s5 + $0x34] sm:$0xf0]  ;;  %v4896_v36 = vor.u32 %v5592_v18, %v4895_v17  ;;  %v5620_v12 = vld [vmem:[%s8257_s5 + $0x7dc] sm:$0xf] }
 0x1d3   : > { %2863 = vmatpush.bf16.msra.mxu3 %v4384_v27  ;;  %2885 = vmatpush.bf16.msrb.mxu1 %v5024_v28  ;;  %v2545_v19 = vpop.f32.mrf.mxu2  ;;  %v4671_v27 = vld [vmem:[%s8257_s5 + $0x518] sm:$0xf]  ;;  %v4032_v39 = vor.u32 %v5376_v26, %v4031_v25  ;;  %v5404_v17 = vld [vmem:[%s8257_s5 + $0x11c] sm:$0xf] }
 0x1d4   : > { %v5536_v28 = vld [vmem:[%s8257_s5 + $0x534] sm:$0xf0]  ;;  %v4161_v18 = vld [vmem:[%s8257_s5 + $0x138] sm:$0xf0] }
 0x1d5   : > { %2849 = vmatpush.bf16.msra.mxu2 %v4160_v34  ;;  %2827 = vmatpush.bf16.msra.mxu0 %v4540_v46  ;;  %v2569_v29 = vpop.f32.mrf.mxu0  ;;  %v7759_v30 = vpop.f32.mrf.mxu3  ;;  %v4257_v34 = vld [vmem:[%s8257_s5 + $0x1f8] sm:$0xf0]  ;;  %v4672_v40 = vor.u32 %v5536_v28, %v4671_v27  ;;  %v4863_v41 = vld [vmem:[%s8257_s5 + $0x698] sm:$0xf]  ;;  %v4164_v27 = vor.u32 %v5404_v17, %v4161_v18 }
 0x1d6   : > { %v2570_v35 = vadd.f32 %v2569_v29, %v2557_v5  ;;  %v4449_v46 = vld [vmem:[%s8257_s5 + $0x378] sm:$0xf0]  ;;  %v4864_v51 = vor.u32 %v5584_v42, %v4863_v41  ;;  %v4831_v55 = vld [vmem:[%s8257_s5 + $0x658] sm:$0xf] }
 0x1d7   : > { %2864 = vmatpush.bf16.msra.mxu3 %v4352_v44  ;;  %2886 = vmatpush.bf16.msrb.mxu1 %v4992_v45  ;;  %v2584_v38 = vpop.f32.mrf.mxu1  ;;  %v4260_v45 = vor.u32 %v5428_v33, %v4257_v34  ;;  %v4452_v53 = vor.u32 %v5476_v43, %v4449_v46  ;;  %v5576_v56 = vld [vmem:[%s8257_s5 + $0x674] sm:$0xf0]  ;;  %v4353_v25 = vld [vmem:[%s8257_s5 + $0x2b8] sm:$0xf0] }
 0x1d8   : > { %2828 = vmatmul.bf16.vlgmr.msra.gmra.mxu0 %v6900_v23  ;;  %v7776_v44 = vadd.f32 %v2582_v6, %v2570_v35  ;;  %v5520_v61 = vld [vmem:[%s8257_s5 + $0x4b4] sm:$0xf0]  ;;  %v4832_v3 = vor.u32 %v5576_v56, %v4831_v55  ;;  %v5612_v28 = vld [vmem:[%s8257_s5 + $0x79c] sm:$0xf]  ;;  %v4356_v42 = vor.u32 %v5452_v24, %v4353_v25 }
 0x1d9   : > { %2850 = vmatpush.bf16.msra.mxu2 %v4128_v47  ;;  %2872 = vmatpush.bf16.msrb.mxu0 %v4768_v52  ;;  %v4639_v47 = vld [vmem:[%s8257_s5 + $0x4d8] sm:$0xf]  ;;  %v4993_v29 = vld [vmem:[%s8257_s5 + $0x7b8] sm:$0xf0] }
 0x1da   : > { %v4640_v54 = vor.u32 %v5528_v48, %v4639_v47  ;;  %v4799_v5 = vld [vmem:[%s8257_s5 + $0x618] sm:$0xf]  ;;  %v4129_v38 = vld [vmem:[%s8257_s5 + $0xf8] sm:$0xf0]  ;;  %v4996_v43 = vor.u32 %v5612_v28, %v4993_v29  ;;  %vm2950_vm7 = vcmp.ge.f32.partialorder %v7776_v44, 0.0 }
 0x1db   : > { %2865 = vmatpush.bf16.msra.mxu3 %v4320_v60  ;;  %2887 = vmatpush.bf16.msrb.mxu1 %v4960_v62  ;;  %v7794_v52 = vpop.f32.mrf.mxu2  ;;  %v4607_v60 = vld [vmem:[%s8257_s5 + $0x498] sm:$0xf]  ;;  %v5444_v47 = vld [vmem:[%s8257_s5 + $0x25c] sm:$0xf] }
 0x1dc   : > { %v4608_v7 = vor.u32 %v5520_v61, %v4607_v60  ;;  %v5568_v8 = vld [vmem:[%s8257_s5 + $0x634] sm:$0xf0]  ;;  %v4321_v48 = vld [vmem:[%s8257_s5 + $0x278] sm:$0xf0] }
 0x1dd   : > { %2851 = vmatpush.bf16.msra.mxu2 %v4096_v0  ;;  %2873 = vmatpush.bf16.msrb.mxu0 %v4736_v4  ;;  %v2571_v62 = vpop.f32.mrf.mxu0  ;;  %v2610_v0 = vpop.f32.mrf.mxu3  ;;  %v4420_v4 = vor.u32 %v5468_v57, %v4417_v59  ;;  %v4800_v19 = vor.u32 %v5568_v8, %v4799_v5  ;;  %v4543_v33 = vld [vmem:[%s8257_s5 + $0x418] sm:$0xf]  ;;  %v5548_v55 = vld [vmem:[%s8257_s5 + $0x59c] sm:$0xf]  ;;  %v4324_v57 = vor.u32 %v5444_v47, %v4321_v48  ;;  %v5631_v47 = vld [vmem:[%s8259_s7 + $0x30] sm:$0xff] }
 0x1de   : > { %v4737_v56 = vld [vmem:[%s8257_s5 + $0x5b8] sm:$0xf0] }
 0x1df   : > { %2866 = vmatpush.bf16.msra.mxu3 %v4288_v13  ;;  %2888 = vmatpush.bf16.msrb.mxu1 %v4928_v14  ;;  %v7824_v6 = vpop.f32.mrf.mxu1  ;;  %v5025_v13 = vld [vmem:[%s8257_s5 + $0x7f8] sm:$0xf0]  ;;  %v4575_v14 = vld [vmem:[%s8257_s5 + $0x458] sm:$0xf]  ;;  %v4740_v2 = vor.u32 %v5548_v55, %v4737_v56 }
 0x1e0   : > { %v5028_v22 = vor.u32 %v5620_v12, %v5025_v13  ;;  %v5436_v61 = vld [vmem:[%s8257_s5 + $0x21c] sm:$0xf] }
 0x1e1   : > { %2852 = vmatpush.bf16.msra.mxu2 %v4064_v20  ;;  %2874 = vmatpush.bf16.msrb.mxu0 %v4704_v21  ;;  %v4388_v21 = vor.u32 %v5460_v9, %v4385_v10  ;;  %v4289_v62 = vld [vmem:[%s8257_s5 + $0x238] sm:$0xf0] }
 0x1e2   : > { %2867 = vmatmul.bf16.vlgmr.msra.gmra.mxu3 %v6795_v16  ;;  %v4929_v5 = vld [vmem:[%s8257_s5 + $0x738] sm:$0xf0] }
 0x1e3   : > { %2911 = vmatpush.bf16.msrb.mxu3 %v4516_v15  ;;  %2889 = vmatpush.bf16.msrb.mxu1 %v4896_v36  ;;  %v5512_v15 = vld [vmem:[%s8257_s5 + $0x474] sm:$0xf0]  ;;  %v2597_v20 = vpop.f32.mrf.mxu2  ;;  %v5540_v8 = vld [vmem:[%s8257_s5 + $0x55c] sm:$0xf] }
 0x1e4   : > { %v4576_v26 = vor.u32 %v5512_v15, %v4575_v14  ;;  %v5504_v36 = vld [vmem:[%s8257_s5 + $0x434] sm:$0xf0]  ;;  %v4705_v9 = vld [vmem:[%s8257_s5 + $0x578] sm:$0xf0] }
 0x1e5   : > { %2853 = vmatpush.bf16.msra.mxu2 %v4032_v39  ;;  %2875 = vmatpush.bf16.msrb.mxu0 %v4672_v40  ;;  %v7868_v34 = vpop.f32.mrf.mxu0  ;;  %v7870_v35 = vpop.f32.mrf.mxu3  ;;  %v5556_v39 = vld [vmem:[%s8257_s5 + $0x5dc] sm:$0xf]  ;;  %v4708_v15 = vor.u32 %v5540_v8, %v4705_v9  ;;  %v5655_v8 = vld [vmem:[%s8259_s7 + $0xf0] sm:$0xff] }
 0x1e6   : > { %v4769_v40 = vld [vmem:[%s8257_s5 + $0x5f8] sm:$0xf0] }
 0x1e7   : > { %2912 = vmatpush.bf16.msrb.mxu3 %v4484_v37  ;;  %2890 = vmatpush.bf16.msrb.mxu1 %v4864_v51  ;;  %v5396_v37 = vld [vmem:[%s8257_s5 + $0xdc] sm:$0xf]  ;;  %v2636_v41 = vpop.f32.mrf.mxu1  ;;  %v4772_v50 = vor.u32 %v5556_v39, %v4769_v40 }
 0x1e8   : > { %2854 = vmatmul.bf16.vlgmr.msra.gmra.mxu2 %v6817_v31  ;;  %v4132_v46 = vor.u32 %v5396_v37, %v4129_v38  ;;  %v4961_v51 = vld [vmem:[%s8257_s5 + $0x778] sm:$0xf0] }
 0x1e9   : > { %2898 = vmatpush.bf16.msrb.mxu2 %v4260_v45  ;;  %2876 = vmatpush.bf16.msrb.mxu0 %v4640_v54  ;;  %v4544_v45 = vor.u32 %v5504_v36, %v4543_v33  ;;  %v4097_v54 = vld [vmem:[%s8257_s5 + $0xb8] sm:$0xf0]  ;;  %v4964_v59 = vor.u32 %v5604_v49, %v4961_v51 }
 0x1ea   : > { %v5640_v13 = vld [vmem:[%s8259_s7 + $0x78] sm:$0xff] }
 0x1eb   : > { %2913 = vmatpush.bf16.msrb.mxu3 %v4452_v53  ;;  %2891 = vmatpush.bf16.msrb.mxu1 %v4832_v3  ;;  %v5388_v53 = vld [vmem:[%s8257_s5 + $0x9c] sm:$0xf] }
 0x1ec   : > { %v4100_v60 = vor.u32 %v5388_v53, %v4097_v54  ;;  %v5596_v3 = vld [vmem:[%s8257_s5 + $0x71c] sm:$0xf]  ;;  %v5637_v53 = vld [vmem:[%s8259_s7 + $0x60] sm:$0xff] }
 0x1ed   : > { %2899 = vmatpush.bf16.msrb.mxu2 %v4228_v58  ;;  %2877 = vmatpush.bf16.msrb.mxu0 %v4608_v7  ;;  %v7912_v58 = vpop.f32.mrf.mxu2  ;;  %v2623_v0 = vpop.f32.mrf.mxu0  ;;  %v4065_v7 = vld [vmem:[%s8257_s5 + $0x78] sm:$0xf0]  ;;  %v4932_v12 = vor.u32 %v5596_v3, %v4929_v5  ;;  %v5629_v3 = vld [vmem:[%s8259_s7 + $0x20] sm:$0xff] }
 0x1ee   : > { %v2662_v1 = vpop.f32.mrf.mxu3  ;;  %v5588_v17 = vld [vmem:[%s8257_s5 + $0x6dc] sm:$0xf] }
 0x1ef   : > { %2914 = vmatpush.bf16.msrb.mxu3 %v4420_v4  ;;  %2892 = vmatpush.bf16.msrb.mxu1 %v4800_v19  ;;  %v5380_v4 = vld [vmem:[%s8257_s5 + $0x5c] sm:$0xf]  ;;  %v7939_v10 = vpop.f32.mrf.mxu1 }
 0x1f0   : > { %v4068_v14 = vor.u32 %v5380_v4, %v4065_v7  ;;  %v4897_v18 = vld [vmem:[%s8257_s5 + $0x6f8] sm:$0xf0]  ;;  %v5635_v7 = vld [vmem:[%s8259_s7 + $0x50] sm:$0xff] }
 0x1f1   : > { %2900 = vmatpush.bf16.msrb.mxu2 %v4196_v11  ;;  %2878 = vmatpush.bf16.msrb.mxu0 %v4576_v26  ;;  %v4292_v11 = vor.u32 %v5436_v61, %v4289_v62  ;;  %v5372_v19 = vld [vmem:[%s8257_s5 + $0x1c] sm:$0xf]  ;;  %v4900_v25 = vor.u32 %v5588_v17, %v4897_v18  ;;  %v5639_v26 = vld [vmem:[%s8259_s7 + $0x70] sm:$0xff] }
 0x1f2   : > { %2893 = vmatmul.bf16.vlgmr.msrb.gmra.mxu1 %v6860_v63  ;;  %v4033_v20 = vld [vmem:[%s8257_s5 + $0x38] sm:$0xf0]  ;;  %v5627_v17 = vld [vmem:[%s8259_s7 + $0x10] sm:$0xff] }
 0x1f3   : > { %2915 = vmatpush.bf16.msrb.mxu3 %v4388_v21  ;;  %2937 = vmatpush.bf16.msra.mxu1 %v5028_v22  ;;  %v5532_v21 = vld [vmem:[%s8257_s5 + $0x51c] sm:$0xf] }
 0x1f4   : > { %v4673_v22 = vld [vmem:[%s8257_s5 + $0x538] sm:$0xf0] }
 0x1f5   : > { %2901 = vmatpush.bf16.msrb.mxu2 %v4164_v27  ;;  %2879 = vmatpush.bf16.msrb.mxu0 %v4544_v45  ;;  %v2649_v24 = vpop.f32.mrf.mxu2  ;;  %v4036_v27 = vor.u32 %v5372_v19, %v4033_v20  ;;  %v4676_v28 = vor.u32 %v5532_v21, %v4673_v22  ;;  %v5580_v29 = vld [vmem:[%s8257_s5 + $0x69c] sm:$0xf]  ;;  %v7972_v36 = vpop.f32.mrf.mxu0  ;;  %v5647_v19 = vld [vmem:[%s8259_s7 + $0xb0] sm:$0xff]  ;;  %v5633_v21 = vld [vmem:[%s8259_s7 + $0x40] sm:$0xff] }
 0x1f6   : > { %v4865_v33 = vld [vmem:[%s8257_s5 + $0x6b8] sm:$0xf0]  ;;  %v5653_v24 = vld [vmem:[%s8259_s7 + $0xe0] sm:$0xff] }
 0x1f7   : > { %2916 = vmatpush.bf16.msrb.mxu3 %v4356_v42  ;;  %2938 = vmatpush.bf16.msra.mxu1 %v4996_v43  ;;  %v5632_v37 = vld [vmem:[%s8259_s7 + $0x38] sm:$0xff]  ;;  %v2688_v40 = vpop.f32.mrf.mxu1  ;;  %v4868_v41 = vor.u32 %v5580_v29, %v4865_v33  ;;  %v5638_v42 = vld [vmem:[%s8259_s7 + $0x68] sm:$0xff] }
 0x1f8   : > { %2880 = vmatmul.bf16.vlgmr.msrb.gmra.mxu0 %v6900_v23  ;;  %v5524_v38 = vld [vmem:[%s8257_s5 + $0x4dc] sm:$0xf]  ;;  %v5625_v40 = vld [vmem:[%s8259_s7] sm:$0xff] }
 0x1f9   : > { %2902 = vmatpush.bf16.msrb.mxu2 %v4132_v46  ;;  %2924 = vmatpush.bf16.msra.mxu0 %v4772_v50  ;;  %v4641_v39 = vld [vmem:[%s8257_s5 + $0x4f8] sm:$0xf0] }
 0x1fa   : > { %v4644_v43 = vor.u32 %v5524_v38, %v4641_v39  ;;  %v5572_v45 = vld [vmem:[%s8257_s5 + $0x65c] sm:$0xf] }
 0x1fb   : > { %2917 = vmatpush.bf16.msrb.mxu3 %v4324_v57  ;;  %2939 = vmatpush.bf16.msra.mxu1 %v4964_v59  ;;  %v4833_v46 = vld [vmem:[%s8257_s5 + $0x678] sm:$0xf0] }
 0x1fc   : > { %v5516_v48 = vld [vmem:[%s8257_s5 + $0x49c] sm:$0xf]  ;;  %v4836_v50 = vor.u32 %v5572_v45, %v4833_v46 }
 0x1fd   : > { %2903 = vmatpush.bf16.msrb.mxu2 %v4100_v60  ;;  %2925 = vmatpush.bf16.msra.mxu0 %v4740_v2  ;;  %v4609_v49 = vld [vmem:[%s8257_s5 + $0x4b8] sm:$0xf0] }
 0x1fe   : > { %v4612_v54 = vor.u32 %v5516_v48, %v4609_v49  ;;  %v5564_v55 = vld [vmem:[%s8257_s5 + $0x61c] sm:$0xf] }
 0x1ff   : > { %2918 = vmatpush.bf16.msrb.mxu3 %v4292_v11  ;;  %2940 = vmatpush.bf16.msra.mxu1 %v4932_v12  ;;  %v4801_v56 = vld [vmem:[%s8257_s5 + $0x638] sm:$0xf0] }
 0x200   : > { %v5508_v57 = vld [vmem:[%s8257_s5 + $0x45c] sm:$0xf]  ;;  %v4804_v60 = vor.u32 %v5564_v55, %v4801_v56  ;;  %v5671_v55 = vld [vmem:[%s8259_s7 + $0x170] sm:$0xff] }
 0x201   : > { %2904 = vmatpush.bf16.msrb.mxu2 %v4068_v14  ;;  %2926 = vmatpush.bf16.msra.mxu0 %v4708_v15  ;;  %v4577_v59 = vld [vmem:[%s8257_s5 + $0x478] sm:$0xf0]  ;;  %v5634_v14 = vld [vmem:[%s8259_s7 + $0x48] sm:$0xff]  ;;  %v1241_v15 = vperm.slane %v7652_v32, 3  ;;  %v5643_v56 = vld [vmem:[%s8259_s7 + $0x90] sm:$0xff] }
 0x202   : > { %2919 = vmatmul.bf16.vlgmr.msrb.gmra.mxu3 %v6795_v16  ;;  %v1239_v16 = vperm.slane %v7652_v32, 1  ;;  %v5636_v62 = vld [vmem:[%s8259_s7 + $0x58] sm:$0xff]  ;;  %v4580_v2 = vor.u32 %v5508_v57, %v4577_v59  ;;  %v5649_v57 = vld [vmem:[%s8259_s7 + $0xc0] sm:$0xff]  ;;  %v5670_v59 = vld [vmem:[%s8259_s7 + $0x168] sm:$0xff] }
 0x203   : > { %3511 = vmatpush.bf16.msra.mxu3 %v5640_v13  ;;  %2941 = vmatpush.bf16.msra.mxu1 %v4900_v25  ;;  %v5656_v0 = vld [vmem:[%s8259_s7 + $0xf8] sm:$0xff]  ;;  %v5626_v25 = vld [vmem:[%s8259_s7 + $0x8] sm:$0xff] }
 0x204   : > { %v2596_v51 = vadd.f32 %v7794_v52, %v1239_v16  ;;  %v5630_v52 = vld [vmem:[%s8259_s7 + $0x28] sm:$0xff]  ;;  %v4545_v4 = vld [vmem:[%s8257_s5 + $0x438] sm:$0xf0]  ;;  %v5645_v16 = vld [vmem:[%s8259_s7 + $0xa0] sm:$0xff] }
 0x205   : > { %2905 = vmatpush.bf16.msrb.mxu2 %v4036_v27  ;;  %2927 = vmatpush.bf16.msra.mxu0 %v4676_v28  ;;  %v2712_v1 = vpop.f32.mrf.mxu3  ;;  %v5628_v9 = vld [vmem:[%s8259_s7 + $0x18] sm:$0xff]  ;;  %v1240_v27 = vperm.slane %v7652_v32, 2  ;;  %v2958_v28 = vmul.f32 0.01, %v7776_v44 }
 0x206   : > { %v2609_v61 = vadd.f32 %v7759_v30, %v2596_v51  ;;  %v5500_v30 = vld [vmem:[%s8257_s5 + $0x41c] sm:$0xf] }
 0x207   : > { %3512 = vmatpush.bf16.msra.mxu3 %v5639_v26  ;;  %2942 = vmatpush.bf16.msra.mxu1 %v4868_v41  ;;  %v5648_v12 = vld [vmem:[%s8259_s7 + $0xb8] sm:$0xff]  ;;  %v2648_v41 = vadd.f32 %v7912_v58, %v1240_v27  ;;  %v5651_v58 = vld [vmem:[%s8259_s7 + $0xd0] sm:$0xff] }
 0x208   : > { %2906 = vmatmul.bf16.vlgmr.msrb.gmra.mxu2 %v6817_v31  ;;  %v2675_v31 = vpop.f32.mrf.mxu0  ;;  %v2622_v5 = vadd.f32 %v7868_v34, %v2609_v61  ;;  %v4548_v34 = vor.u32 %v5500_v30, %v4545_v4  ;;  %v5644_v49 = vld [vmem:[%s8259_s7 + $0x98] sm:$0xff]  ;;  %v5642_v61 = vld [vmem:[%s8259_s7 + $0x88] sm:$0xff] }
 0x209   : > { %3498 = vmatpush.bf16.msra.mxu2 %v5632_v37  ;;  %2928 = vmatpush.bf16.msra.mxu0 %v4644_v43  ;;  %v5652_v37 = vld [vmem:[%s8259_s7 + $0xd8] sm:$0xff]  ;;  %v2966_v43 = vsel %vm2950_vm7, %v7776_v44, %v2958_v28  ;;  %v2661_v48 = vadd.f32 %v7870_v35, %v2648_v41  ;;  %v5663_v44 = vld [vmem:[%s8259_s7 + $0x130] sm:$0xff]  ;;  %v5650_v35 = vld [vmem:[%s8259_s7 + $0xc8] sm:$0xff] }
 0x20a   : > { %v2635_v11 = vadd.f32 %v7824_v6, %v2622_v5  ;;  %v5654_v6 = vld [vmem:[%s8259_s7 + $0xe8] sm:$0xff]  ;;  %v5672_v51 = vld [vmem:[%s8259_s7 + $0x178] sm:$0xff]  ;;  %v5669_v5 = vld [vmem:[%s8259_s7 + $0x160] sm:$0xff] }
 0x20b   : > { %3513 = vmatpush.bf16.msra.mxu3 %v5638_v42  ;;  %2943 = vmatpush.bf16.msra.mxu1 %v4836_v50  ;;  %v2699_v13 = vpop.f32.mrf.mxu2  ;;  %v5664_v42 = vld [vmem:[%s8259_s7 + $0x138] sm:$0xff] }
 0x20c   : > { %v2959_v18 = vmul.f32 0.01, %v2635_v11  ;;  %vm2951_vm6 = vcmp.ge.f32.partialorder %v2635_v11, 0.0  ;;  %v2700_v22 = vadd.f32 %v2699_v13, %v1241_v15  ;;  %v5667_v15 = vld [vmem:[%s8259_s7 + $0x150] sm:$0xff] }
 0x20d   : > { %3499 = vmatpush.bf16.msra.mxu2 %v5631_v47  ;;  %2929 = vmatpush.bf16.msra.mxu0 %v4612_v54  ;;  %v2974_v47 = vpack.c.bf16 %v2966_v43, %v2966_v43 }
 0x20e   : > { %v2967_v26 = vsel %vm2951_vm6, %v2635_v11, %v2959_v18  ;;  %v2713_v38 = vadd.f32 %v2712_v1, %v2700_v22  ;;  %v5668_v11 = vld [vmem:[%s8259_s7 + $0x158] sm:$0xff] }
 0x20f   : > { %3514 = vmatpush.bf16.msra.mxu3 %v5637_v53  ;;  %2944 = vmatpush.bf16.msra.mxu1 %v4804_v60  ;;  %v2738_v20 = vpop.f32.mrf.mxu1  ;;  %v2975_v33 = vpack.c.bf16 %v2967_v26, %v2967_v26  ;;  %v2674_v53 = vadd.f32 %v7972_v36, %v2661_v48  ;;  %v5662_v36 = vld [vmem:[%s8259_s7 + $0x128] sm:$0xff]  ;;  %v5680_v26 = vld [vmem:[%s8259_s7 + $0x1b8] sm:$0xff] }
 0x211   : > { %3500 = vmatpush.bf16.msra.mxu2 %v5630_v52  ;;  %2930 = vmatpush.bf16.msra.mxu0 %v4580_v2  ;;  %v2687_v52 = vadd.f32 %v7939_v10, %v2674_v53  ;;  %v5661_v10 = vld [vmem:[%s8259_s7 + $0x120] sm:$0xff] }
 0x212   : > { %2945 = vmatmul.bf16.vlgmr.msra.gmra.mxu1 %v6860_v63  ;;  %v2714_v63 = vpop.f32.mrf.mxu3  ;;  %v5641_v2 = vld [vmem:[%s8259_s7 + $0x80] sm:$0xff] }
 0x213   : > { %3515 = vmatpush.bf16.msra.mxu3 %v5636_v62  ;;  %3537 = vmatpush.bf16.msrb.mxu1 %v5656_v0  ;;  %v2701_v29 = vpop.f32.mrf.mxu2  ;;  %v2960_v0 = vmul.f32 0.01, %v2687_v52  ;;  %vm2952_vm9 = vcmp.ge.f32.partialorder %v2687_v52, 0.0  ;;  %v5673_v53 = vld [vmem:[%s8259_s7 + $0x180] sm:$0xff] }
 0x214   : > { %v5679_v29 = vld [vmem:[%s8259_s7 + $0x1b0] sm:$0xff] }
 0x215   : > { %3501 = vmatpush.bf16.msra.mxu2 %v5629_v3  ;;  %2931 = vmatpush.bf16.msra.mxu0 %v4548_v34  ;;  %v2725_v39 = vpop.f32.mrf.mxu0  ;;  %v5660_v3 = vld [vmem:[%s8259_s7 + $0x118] sm:$0xff]  ;;  %v2968_v30 = vsel %vm2952_vm9, %v2687_v52, %v2960_v0  ;;  %v5659_v34 = vld [vmem:[%s8259_s7 + $0x110] sm:$0xff] }
 0x216   : > { %v2726_v45 = vadd.f32 %v2725_v39, %v2713_v38  ;;  %v5677_v38 = vld [vmem:[%s8259_s7 + $0x1a0] sm:$0xff] }
 0x217   : > { %3516 = vmatpush.bf16.msra.mxu3 %v5635_v7  ;;  %3538 = vmatpush.bf16.msrb.mxu1 %v5655_v8  ;;  %v2740_v46 = vpop.f32.mrf.mxu1  ;;  %v1242_v7 = vperm.slane %v7652_v32, 4 }
 0x218   : > { %2932 = vmatmul.bf16.vlgmr.msra.gmra.mxu0 %v6900_v23  ;;  %v5646_v23 = vld [vmem:[%s8259_s7 + $0xa8] sm:$0xff]  ;;  %v2739_v50 = vadd.f32 %v2738_v20, %v2726_v45  ;;  %v5675_v45 = vld [vmem:[%s8259_s7 + $0x190] sm:$0xff] }
 0x219   : > { %3502 = vmatpush.bf16.msra.mxu2 %v5628_v9  ;;  %3524 = vmatpush.bf16.msrb.mxu0 %v5648_v12  ;;  %v2976_v9 = vpack.c.bf16 %v2968_v30, %v2968_v30  ;;  %v5682_v30 = vld [vmem:[%s8259_s7 + $0x1c8] sm:$0xff] }
 0x21a   : > { %v2961_v31 = vmul.f32 0.01, %v2739_v50  ;;  %vm2953_vm8 = vcmp.ge.f32.partialorder %v2739_v50, 0.0 }
 0x21b   : > { %3517 = vmatpush.bf16.msra.mxu3 %v5634_v14  ;;  %3539 = vmatpush.bf16.msrb.mxu1 %v5654_v6  ;;  %v5658_v14 = vld [vmem:[%s8259_s7 + $0x108] sm:$0xff] }
 0x21c   : > { %v2969_v62 = vsel %vm2953_vm8, %v2739_v50, %v2961_v31  ;;  %v5686_v31 = vld [vmem:[%s8259_s7 + $0x1e8] sm:$0xff] }
 0x21d   : > { %3503 = vmatpush.bf16.msra.mxu2 %v5627_v17  ;;  %3525 = vmatpush.bf16.msrb.mxu0 %v5647_v19  ;;  %v2727_v54 = vpop.f32.mrf.mxu0  ;;  %v2977_v1 = vpack.c.bf16 %v2969_v62, %v2969_v62  ;;  %v5657_v17 = vld [vmem:[%s8259_s7 + $0x100] sm:$0xff] }
 0x21f   : > { %3518 = vmatpush.bf16.msra.mxu3 %v5633_v21  ;;  %3540 = vmatpush.bf16.msrb.mxu1 %v5653_v24  ;;  %v5666_v21 = vld [vmem:[%s8259_s7 + $0x148] sm:$0xff] }
 0x221   : > { %3504 = vmatpush.bf16.msra.mxu2 %v5626_v25  ;;  %3526 = vmatpush.bf16.msrb.mxu0 %v5646_v23  ;;  %v5665_v25 = vld [vmem:[%s8259_s7 + $0x140] sm:$0xff] }
 0x222   : > { %3519 = vmatmul.bf16.vlgmr.msra.gmra.mxu3 %v2975_v33  ;;  %v5678_v33 = vld [vmem:[%s8259_s7 + $0x1a8] sm:$0xff] }
 0x223   : > { %3541 = vmatpush.bf16.msrb.mxu1 %v5652_v37  ;;  %3563 = vmatpush.bf16.msrb.mxu3 %v5672_v51 }
 0x225   : > { %3505 = vmatpush.bf16.msra.mxu2 %v5625_v40  ;;  %3527 = vmatpush.bf16.msrb.mxu0 %v5645_v16  ;;  %v2764_v60 = vpop.f32.mrf.mxu3  ;;  %v1243_v40 = vperm.slane %v7652_v32, 5  ;;  %v5676_v16 = vld [vmem:[%s8259_s7 + $0x198] sm:$0xff] }
 0x227   : > { %3542 = vmatpush.bf16.msrb.mxu1 %v5651_v58  ;;  %3564 = vmatpush.bf16.msrb.mxu3 %v5671_v55 }
 0x228   : > { %3506 = vmatmul.bf16.vlgmr.msra.gmra.mxu2 %v2974_v47 }
 0x229   : > { %3550 = vmatpush.bf16.msrb.mxu2 %v5664_v42  ;;  %3528 = vmatpush.bf16.msrb.mxu0 %v5644_v49  ;;  %v5674_v49 = vld [vmem:[%s8259_s7 + $0x188] sm:$0xff] }
 0x22b   : > { %3543 = vmatpush.bf16.msrb.mxu1 %v5650_v35  ;;  %3565 = vmatpush.bf16.msrb.mxu3 %v5670_v59  ;;  %v2751_v4 = vpop.f32.mrf.mxu2  ;;  %v5688_v35 = vld [vmem:[%s8259_s7 + $0x1f8] sm:$0xff] }
 0x22c   : > { %v2752_v13 = vadd.f32 %v2751_v4, %v1242_v7 }
 0x22d   : > { %3551 = vmatpush.bf16.msrb.mxu2 %v5663_v44  ;;  %3529 = vmatpush.bf16.msrb.mxu0 %v5643_v56  ;;  %v2766_v8 = vpop.f32.mrf.mxu3 }
 0x22e   : > { %v2765_v63 = vadd.f32 %v2764_v60, %v2752_v13  ;;  %v1244_v60 = vperm.slane %v7652_v32, 6 }
 0x22f   : > { %3544 = vmatpush.bf16.msrb.mxu1 %v5649_v57  ;;  %3566 = vmatpush.bf16.msrb.mxu3 %v5669_v5  ;;  %v2790_v12 = vpop.f32.mrf.mxu1  ;;  %v5685_v57 = vld [vmem:[%s8259_s7 + $0x1e0] sm:$0xff] }
 0x231   : > { %3552 = vmatpush.bf16.msrb.mxu2 %v5662_v36  ;;  %3530 = vmatpush.bf16.msrb.mxu0 %v5642_v61  ;;  %v5687_v36 = vld [vmem:[%s8259_s7 + $0x1f0] sm:$0xff] }
 0x232   : > { %3545 = vmatmul.bf16.vlgmr.msrb.gmra.mxu1 %v2977_v1  ;;  %v5683_v1 = vld [vmem:[%s8259_s7 + $0x1d0] sm:$0xff] }
 0x233   : > { %3567 = vmatpush.bf16.msrb.mxu3 %v5668_v11  ;;  %v2753_v6 = vpop.f32.mrf.mxu2  ;;  %3589 = vmatpush.bf16.msra.mxu1 %v5688_v35 }
 0x234   : > { %v1245_v6 = vperm.slane %v7652_v32, 7  ;;  %v5728_v32 = vld [vmem:[%s8260_s8] ss:$0 sm:$0xff] }
 0x235   : > { %3553 = vmatpush.bf16.msrb.mxu2 %v5661_v10  ;;  %3531 = vmatpush.bf16.msrb.mxu0 %v5641_v2  ;;  %v2777_v18 = vpop.f32.mrf.mxu0  ;;  %v5684_v10 = vld [vmem:[%s8259_s7 + $0x1d8] sm:$0xff] }
 0x236   : > { %v2778_v19 = vadd.f32 %v2777_v18, %v2765_v63 }
 0x237   : > { %3568 = vmatpush.bf16.msrb.mxu3 %v5667_v15  ;;  %v2792_v20 = vpop.f32.mrf.mxu1  ;;  %3590 = vmatpush.bf16.msra.mxu1 %v5687_v36 }
 0x238   : > { %3532 = vmatmul.bf16.vlgmr.msrb.gmra.mxu0 %v2976_v9  ;;  %v2791_v22 = vadd.f32 %v2790_v12, %v2778_v19 }
 0x239   : > { %3554 = vmatpush.bf16.msrb.mxu2 %v5660_v3  ;;  %3576 = vmatpush.bf16.msra.mxu0 %v5680_v26 }
 0x23a   : > { %vm2954_vm10 = vcmp.ge.f32.partialorder %v2791_v22, 0.0  ;;  %v2962_v24 = vmul.f32 0.01, %v2791_v22 }
 0x23b   : > { %3569 = vmatpush.bf16.msrb.mxu3 %v5666_v21  ;;  %3591 = vmatpush.bf16.msra.mxu1 %v5686_v31 }
 0x23c   : > { %v2970_v27 = vsel %vm2954_vm10, %v2791_v22, %v2962_v24 }
 0x23d   : > { %3555 = vmatpush.bf16.msrb.mxu2 %v5659_v34  ;;  %v2978_v23 = vpack.c.bf16 %v2970_v27, %v2970_v27  ;;  %v2779_v28 = vpop.f32.mrf.mxu0  ;;  %3577 = vmatpush.bf16.msra.mxu0 %v5679_v29  ;;  %v5681_v34 = vld [vmem:[%s8259_s7 + $0x1c0] sm:$0xff] }
 0x23f   : > { %3570 = vmatpush.bf16.msrb.mxu3 %v5665_v25  ;;  %3592 = vmatpush.bf16.msra.mxu1 %v5685_v57 }
 0x241   : > { %3556 = vmatpush.bf16.msrb.mxu2 %v5658_v14  ;;  %3578 = vmatpush.bf16.msra.mxu0 %v5678_v33 }
 0x243   : > { %3593 = vmatpush.bf16.msra.mxu1 %v5684_v10 }
 0x245   : > { %3557 = vmatpush.bf16.msrb.mxu2 %v5657_v17  ;;  %v2816_v37 = vpop.f32.mrf.mxu3  ;;  %3579 = vmatpush.bf16.msra.mxu0 %v5677_v38 }
 0x247   : > { %3594 = vmatpush.bf16.msra.mxu1 %v5683_v1 }
 0x248   : > { %3558 = vmatmul.bf16.vlgmr.msrb.gmra.mxu2 %v2978_v23 }
 0x249   : > { %3580 = vmatpush.bf16.msra.mxu0 %v5676_v16 }
 0x24b   : > { %v2803_v39 = vpop.f32.mrf.mxu2  ;;  %3595 = vmatpush.bf16.msra.mxu1 %v5682_v30 }
 0x24c   : > { %v2804_v43 = vadd.f32 %v2803_v39, %v1243_v40 }
 0x24d   : > { %v2818_v41 = vpop.f32.mrf.mxu3  ;;  %3581 = vmatpush.bf16.msra.mxu0 %v5675_v45 }
 0x24e   : > { %v2817_v58 = vadd.f32 %v2816_v37, %v2804_v43 }
 0x24f   : > { %v2842_v42 = vpop.f32.mrf.mxu1  ;;  %3596 = vmatpush.bf16.msra.mxu1 %v5681_v34 }
 0x251   : > { %3582 = vmatpush.bf16.msra.mxu0 %v5674_v49 }
 0x253   : > { %v2805_v46 = vpop.f32.mrf.mxu2 }
 0x255   : > { %v2829_v47 = vpop.f32.mrf.mxu0  ;;  %3583 = vmatpush.bf16.msra.mxu0 %v5673_v53 }
 0x256   : > { %v2830_v48 = vadd.f32 %v2829_v47, %v2817_v58 }
 0x257   : > { %v2844_v44 = vpop.f32.mrf.mxu1 }
 0x258   : > { %v2843_v50 = vadd.f32 %v2842_v42, %v2830_v48 }
 0x25a   : > { %vm2955_vm11 = vcmp.ge.f32.partialorder %v2843_v50, 0.0  ;;  %v2963_v51 = vmul.f32 0.01, %v2843_v50 }
 0x25c   : > { %v2971_v54 = vsel %vm2955_vm11, %v2843_v50, %v2963_v51 }
 0x25d   : > { %v2979_v55 = vpack.c.bf16 %v2971_v54, %v2971_v54  ;;  %v2831_v56 = vpop.f32.mrf.mxu0 }
 0x25f   : > { %3571 = vmatmul.bf16.vlgmr.msrb.gmra.mxu3 %v2979_v55 }
 0x265   : > { %v2868_v52 = vpop.f32.mrf.mxu3 }
 0x26b   : > { %v2855_v59 = vpop.f32.mrf.mxu2 }
 0x26c   : > { %v2856_v0 = vadd.f32 %v2855_v59, %v1244_v60 }
 0x26d   : > { %v2870_v61 = vpop.f32.mrf.mxu3 }
 0x26e   : > { %v2869_v3 = vadd.f32 %v2868_v52, %v2856_v0 }
 0x26f   : > { %v2894_v62 = vpop.f32.mrf.mxu1 }
 0x273   : > { %v2857_v2 = vpop.f32.mrf.mxu2 }
 0x275   : > { %v2881_v5 = vpop.f32.mrf.mxu0 }
 0x276   : > { %v2882_v4 = vadd.f32 %v2881_v5, %v2869_v3 }
 0x277   : > { %v2896_v7 = vpop.f32.mrf.mxu1 }
 0x278   : > { %v2895_v8 = vadd.f32 %v2894_v62, %v2882_v4 }
 0x27a   : > { %vm2956_vm12 = vcmp.ge.f32.partialorder %v2895_v8, 0.0  ;;  %v2964_v9 = vmul.f32 0.01, %v2895_v8 }
 0x27c   : > { %v2972_v11 = vsel %vm2956_vm12, %v2895_v8, %v2964_v9 }
 0x27d   : > { %v2980_v12 = vpack.c.bf16 %v2972_v11, %v2972_v11  ;;  %v2883_v13 = vpop.f32.mrf.mxu0 }
 0x27f   : > { %3584 = vmatmul.bf16.vlgmr.msra.gmra.mxu0 %v2980_v12 }
 0x285   : > { %v2920_v14 = vpop.f32.mrf.mxu3 }
 0x28b   : > { %v2907_v15 = vpop.f32.mrf.mxu2 }
 0x28c   : > { %v2908_v18 = vadd.f32 %v2907_v15, %v1245_v6 }
 0x28d   : > { %v2922_v63 = vpop.f32.mrf.mxu3 }
 0x28e   : > { %v2921_v20 = vadd.f32 %v2920_v14, %v2908_v18 }
 0x28f   : > { %v2946_v17 = vpop.f32.mrf.mxu1 }
 0x293   : > { %v2909_v19 = vpop.f32.mrf.mxu2 }
 0x295   : > { %v2933_v21 = vpop.f32.mrf.mxu0 }
 0x296   : > { %v2934_v22 = vadd.f32 %v2933_v21, %v2921_v20 }
 0x297   : > { %v2948_v24 = vpop.f32.mrf.mxu1 }
 0x298   : > { %v2947_v25 = vadd.f32 %v2946_v17, %v2934_v22 }
 0x29a   : > { %vm2957_vm13 = vcmp.ge.f32.partialorder %v2947_v25, 0.0  ;;  %v2965_v26 = vmul.f32 0.01, %v2947_v25 }
 0x29c   : > { %v2973_v27 = vsel %vm2957_vm13, %v2947_v25, %v2965_v26 }
 0x29d   : > { %v2981_v23 = vpack.c.bf16 %v2973_v27, %v2973_v27  ;;  %v2935_v28 = vpop.f32.mrf.mxu0 }
 0x29f   : > { %3597 = vmatmul.bf16.vlgmr.msra.gmra.mxu1 %v2981_v23 }
 0x2a5   : > { %v3520_v29 = vpop.f32.mrf.mxu3 }
 0x2ab   : > { %v3507_v33 = vpop.f32.mrf.mxu2 }
 0x2ac   : > { %v3508_v37 = vadd.f32 %v5728_v32, %v3507_v33 }
 0x2ad   : > { %v3522_v38 = vpop.f32.mrf.mxu3 }
 0x2ae   : > { %v3521_v39 = vadd.f32 %v3520_v29, %v3508_v37 }
 0x2af   : > { %v3546_v40 = vpop.f32.mrf.mxu1 }
 0x2b3   : > { %v3509_v41 = vpop.f32.mrf.mxu2 }
 0x2b5   : > { %v3533_v16 = vpop.f32.mrf.mxu0 }
 0x2b6   : > { %v3534_v42 = vadd.f32 %v3533_v16, %v3521_v39 }
 0x2b7   : > { %v3548_v43 = vpop.f32.mrf.mxu1 }
 0x2b8   : > { %v3547_v45 = vadd.f32 %v3546_v40, %v3534_v42 }
 0x2bd   : > { %v3535_v46 = vpop.f32.mrf.mxu0 }
 0x2cb   : > { %v3559_v58 = vpop.f32.mrf.mxu2 }
 0x2cc   : > { %v3560_v47 = vadd.f32 %v3559_v58, %v3547_v45 }
 0x2d3   : > { %v3561_v48 = vpop.f32.mrf.mxu2 }
 0x2e2   : > { %v3572_v49 = vpop.f32.mrf.mxu3 }
 0x2e3   : > { %v3573_v53 = vadd.f32 %v3572_v49, %v3560_v47 }
 0x2ea   : > { %v3574_v44 = vpop.f32.mrf.mxu3 }
 0x2fc   : > { %v3585_v50 = vpop.f32.mrf.mxu0 }
 0x2fd   : > { %v3586_v35 = vadd.f32 %v3585_v50, %v3573_v53 }
 0x304   : > { %v3587_v51 = vpop.f32.mrf.mxu0 }
 0x31c   : > { %v3598_v54 = vpop.f32.mrf.mxu1 }
 0x31d   : > { %v3599_v55 = vadd.f32 %v3598_v54, %v3586_v35 }
 0x31f   : > { %5729 = vtanh.f32 %v3599_v55 }
 0x324   : > { %v3600_v56 = vpop.f32.mrf.mxu1 }
 0x325   : > { %v5730_v36 = vpop.eup %5729 }
 0x326   : > { %3603 = vst [vmem:[%s323_s16] sm:$0xff] %v5730_v36 }
 0x327   : > { %5758 = shalt.err (!%p5755_p3)
}
 0x328   : > { %5689 = dma.vmem_to_hbm [thread:$0]  (%p5883_p5), %s3618_s17, 128, %s3620_s25, %s3605_s21  }
 0x329 PF: > { %p5695_p4 = scmp.ge.s32.totalorder %s5793_s12, 2  ;;  %s3631_s26 = sand.u32 1, %s5781_s30  }
 0x32a   : > { %s3632_s29 = scalar_lea.sflag [#allocation3], %s3631_s26 }
 0x32b   : > { %p5692_p7 = pnand %p5695_p4, %p5887_p6 }
 0x32d   : > { %p5693_p8 = pneg %p5692_p7 }
 0x32f   : > { %5776 = dma.done.wait (%p5693_p8), %s3632_s29, 128  }
 0x330   : > { %5778 = vsyncadd (%p5693_p8), %s3632_s29, 4294967168  ;;  %s8267_s11 = sld [smem:[#allocation5_spill]]  ;;  %p19_p9 = scmp.ge.s32.totalorder %s5870_s15, 4  }
 0x331   : > { %s8268_s14 = sld [smem:[#allocation6_spill]]  ;;  %s8269_s30 = smov %s5785_s10 }
 0x332   : > { %s8272_s12 = smov %s5870_s15 }
 0x333   :  { %21 = sbr.rel (!%p19_p9) target bundleno = 3 (0x3), region = 91 }
 0x336   : > { %s8270_s10 = smov %s8267_s11 }
 0x337   : > { %s8271_s11 = smov %s8268_s14 }
 0x338   :  { %3638 = vsyncpa [#allocation3], 1 }
 0x339   :  { %3640 = vsyncpa [#allocation3 + $0x1], 1 }

</bundles_post_ra>
